<compile_context>
chip_gen: v5e
topology: v5e:2x2
jax: 0.10.0
libtpu: 0.0.40
codegen_flags: <defaults>
</compile_context>

<pallas_src>
import functools

import jax
import jax.numpy as jnp
from jax import lax
from jax.experimental import pallas as pl
from jax.experimental.pallas import tpu as pltpu

LANE = 128


def _round_up(n, m):
    return ((n + m - 1) // m) * m


# --------------------------------------------------------------------------
# Fused kernel, grid = (batch_blocks, row_blocks):
#   conv as one K=9C matmul (+bias, ReLU)  ->  masked GAP partial sum into a
#   (TB, F_PAD) scratch  ->  at the last row block: class head and merged
#   (brand | type) head GEMMs for the whole batch block.
# --------------------------------------------------------------------------
def _fused_kernel(x_ref, wc_ref, bc_ref, w1_ref, b1_ref, w23_ref, b23_ref,
                  fc_ref, bt_ref, feat_acc,
                  *, tb, tr, hw, win, inv_hw, f_pad):
    r = pl.program_id(1)

    @pl.when(r == 0)
    def _():
        feat_acc[...] = jnp.zeros_like(feat_acc)

    # --- conv: ONE K=9C contraction over the lane-dense im2col tile -------------
    x = x_ref[...]                                            # (TB, TR, K_PAD) bf16
    xm = x.reshape(tb * tr, x.shape[-1])                      # layout-identical collapse
    y = jnp.dot(xm, wc_ref[...], preferred_element_type=jnp.float32)   # (TB*TR, F_PAD)
    y = jnp.maximum(y + bc_ref[...], 0.0)                     # bias + ReLU
    y = y.reshape(tb, tr, f_pad)

    # --- masked global-average-pool partial sum (VPU/XLU path, no MXU) ----------
    if win > hw:                                              # zero the padded tail rows
        rid = r * tr + lax.broadcasted_iota(jnp.int32, (tr, f_pad), 0)
        y = jnp.where((rid < hw)[None], y, 0.0)
    feat_acc[...] += jnp.sum(y, axis=1)                       # (TB, F_PAD) f32

    # --- heads once per batch block (Dropout = identity in eval mode) -----------
    @pl.when(r == pl.num_programs(1) - 1)
    def _():
        feat = (feat_acc[...] * inv_hw).astype(jnp.bfloat16)  # 1/(H*W) folded in
        fc = jnp.dot(feat, w1_ref[...], preferred_element_type=jnp.float32) + b1_ref[...]
        fc_ref[...] = fc                                      # class_fc (pre-ReLU)
        h = jnp.maximum(fc, 0.0).astype(jnp.bfloat16)         # ReLU for brand/type heads
        bt_ref[...] = jnp.dot(h, w23_ref[...], preferred_element_type=jnp.float32) + b23_ref[...]


def _prepare_weights(p, k_pad, f_pad, nc_pad, mt_pad):
    f, c = p["conv_w"].shape[0], p["conv_w"].shape[1]
    nc = p["class_w"].shape[0]
    nm = p["brand_w"].shape[0]
    nt = p["type_w"].shape[0]

    # conv weight (F, C, 3, 3) -> (9C, F_pad): K ordered (tap, channel), matching im2col
    wc = p["conv_w"].transpose(2, 3, 1, 0).reshape(9 * c, f)
    wc = jnp.pad(wc, ((0, k_pad - 9 * c), (0, f_pad - f))).astype(jnp.bfloat16)
    bc = jnp.pad(p["conv_b"], (0, f_pad - f)).reshape(1, f_pad).astype(jnp.float32)

    # class head: (num_classes, F) -> (F_pad, NC_pad), bf16
    w1 = jnp.pad(p["class_w"].T, ((0, f_pad - f), (0, nc_pad - nc))).astype(jnp.bfloat16)
    b1 = jnp.pad(p["class_b"], (0, nc_pad - nc)).reshape(1, nc_pad).astype(jnp.float32)

    # brand + type heads merged into one lane-dense GEMM: (NC_pad, MT_pad), bf16
    w23 = jnp.concatenate([p["brand_w"].T, p["type_w"].T], axis=1)
    w23 = jnp.pad(w23, ((0, nc_pad - nc), (0, mt_pad - (nm + nt)))).astype(jnp.bfloat16)
    b23 = jnp.concatenate([p["brand_b"], p["type_b"]])
    b23 = jnp.pad(b23, (0, mt_pad - (nm + nt))).reshape(1, mt_pad).astype(jnp.float32)
    return wc, bc, w1, b1, w23, b23


def network_v3_forward(x, params):
    B, C, H, W = x.shape
    F = params["conv_w"].shape[0]
    num_classes = params["class_w"].shape[0]
    num_makes = params["brand_w"].shape[0]
    num_types = params["type_w"].shape[0]

    HW = H * W
    TR = min(_round_up(HW, 8), 256)              # row tile (bounds VMEM at large images)
    WIN = _round_up(HW, TR)                      # padded row extent, multiple of TR
    K = 9 * C
    K_PAD = _round_up(K, LANE)
    F_PAD = _round_up(F, LANE)
    NC_PAD = _round_up(num_classes, LANE)
    MT_PAD = _round_up(num_makes + num_types, LANE)
    TB = min(8, B)                               # samples per grid step (fills MXU rows)
    B_PAD = _round_up(B, TB)
    NB, NR = B_PAD // TB, WIN // TR

    # glue: NCHW -> zero-padded NHWC -> lane-dense im2col (B_pad, WIN, K_PAD), bf16.
    # (9x replication of a tiny per-sample image; nothing like a real blowup.)
    xh = jnp.transpose(x, (0, 2, 3, 1))                             # (B, H, W, C)
    xp = jnp.pad(xh, ((0, 0), (1, 1), (1, 1), (0, 0)))              # (B, H+2, W+2, C)
    cols = [xp[:, dy:dy + H, dx:dx + W, :] for dy in range(3) for dx in range(3)]
    xim = jnp.concatenate(cols, axis=-1).reshape(B, HW, K)          # (B, HW, 9C)
    xim = jnp.pad(xim, ((0, B_PAD - B), (0, WIN - HW), (0, K_PAD - K))).astype(jnp.bfloat16)

    wc, bc, w1, b1, w23, b23 = _prepare_weights(params, K_PAD, F_PAD, NC_PAD, MT_PAD)

    kernel = functools.partial(_fused_kernel, tb=TB, tr=TR, hw=HW, win=WIN,
                               inv_hw=1.0 / HW, f_pad=F_PAD)

    flops = 2 * B_PAD * (WIN * K_PAD * F_PAD + F_PAD * NC_PAD + NC_PAD * MT_PAD)
    bytes_accessed = (xim.size * 2 + (wc.size + w1.size + w23.size) * 2
                      + (bc.size + b1.size + b23.size) * 4
                      + B_PAD * (NC_PAD + MT_PAD) * 4)

    def build(single_buffer_weights):
        def wspec(shape):
            # grid-invariant operands: never re-DMA'd; single-buffer to halve their VMEM.
            if single_buffer_weights:
                return pl.BlockSpec(shape, lambda b, r: (0,) * len(shape),
                                    pipeline_mode=pl.Buffered(1))
            return pl.BlockSpec(shape, lambda b, r: (0,) * len(shape))

        return pl.pallas_call(
            kernel,
            out_shape=(jax.ShapeDtypeStruct((B_PAD, NC_PAD), jnp.float32),
                       jax.ShapeDtypeStruct((B_PAD, MT_PAD), jnp.float32)),
            grid_spec=pltpu.PrefetchScalarGridSpec(
                num_scalar_prefetch=0,
                grid=(NB, NR),
                in_specs=[
                    pl.BlockSpec((TB, TR, K_PAD), lambda b, r: (b, r, 0)),  # im2col tile
                    wspec((K_PAD, F_PAD)),     # conv W (bf16)
                    wspec((1, F_PAD)),         # conv bias
                    wspec((F_PAD, NC_PAD)),    # class head W (bf16)
                    wspec((1, NC_PAD)),        # class head bias
                    wspec((NC_PAD, MT_PAD)),   # brand|type W merged (bf16)
                    wspec((1, MT_PAD)),        # brand|type bias merged
                ],
                out_specs=[
                    pl.BlockSpec((TB, NC_PAD), lambda b, r: (b, 0)),
                    pl.BlockSpec((TB, MT_PAD), lambda b, r: (b, 0)),
                ],
                scratch_shapes=[pltpu.VMEM((TB, F_PAD), jnp.float32)],   # GAP accumulator
            ),
            compiler_params=pltpu.CompilerParams(
                dimension_semantics=("parallel", "arbitrary")),
            cost_estimate=pl.CostEstimate(flops=flops, transcendentals=0,
                                          bytes_accessed=bytes_accessed),
        )(xim, wc, bc, w1, b1, w23, b23)

    try:
        fc_pad, bt_pad = build(True)
    except Exception:
        # pipeline_mode=pl.Buffered(1) not supported by this JAX build -> default buffering.
        fc_pad, bt_pad = build(False)

    fc = fc_pad[:B, :num_classes]
    brand_fc = bt_pad[:B, :num_makes]
    type_fc = bt_pad[:B, num_makes:num_makes + num_types]
    return fc, brand_fc, type_fc


# --------------------------------------------------------------------------
# Parameters in PyTorch-equivalent layouts + a pure-JAX reference
# (reference rounds matmul operands to bf16 like the kernel; accumulation f32).
# --------------------------------------------------------------------------
def init_params(key, C, in_features, num_classes, num_makes, num_types):
    ks = jax.random.split(key, 8)
    s = 0.1
    return {
        "conv_w": s * jax.random.normal(ks[0], (in_features, C, 3, 3), jnp.float32),
        "conv_b": s * jax.random.normal(ks[1], (in_features,), jnp.float32),
        "class_w": s * jax.random.normal(ks[2], (num_classes, in_features), jnp.float32),
        "class_b": s * jax.random.normal(ks[3], (num_classes,), jnp.float32),
        "brand_w": s * jax.random.normal(ks[4], (num_makes, num_classes), jnp.float32),
        "brand_b": s * jax.random.normal(ks[5], (num_makes,), jnp.float32),
        "type_w": s * jax.random.normal(ks[6], (num_types, num_classes), jnp.float32),
        "type_b": s * jax.random.normal(ks[7], (num_types,), jnp.float32),
    }


def reference_forward(x, p):
    hp = lax.Precision.HIGHEST
    bf = lambda a: a.astype(jnp.bfloat16).astype(jnp.float32)   # match kernel operand rounding
    y = lax.conv_general_dilated(bf(x), bf(p["conv_w"]), (1, 1), "SAME",
                                 dimension_numbers=("NCHW", "OIHW", "NCHW"),
                                 precision=hp)
    y = jnp.maximum(y + p["conv_b"][None, :, None, None], 0.0)
    feat = jnp.mean(y, axis=(2, 3))
    fc = jnp.dot(bf(feat), bf(p["class_w"]).T, precision=hp) + p["class_b"]
    h = jnp.maximum(fc, 0.0)
    brand = jnp.dot(bf(h), bf(p["brand_w"]).T, precision=hp) + p["brand_b"]
    typ = jnp.dot(bf(h), bf(p["type_w"]).T, precision=hp) + p["type_b"]
    return fc, brand, typ


if __name__ == "__main__":
    B, C, H, W = 2, 4, 16, 16
    in_features, num_classes, num_makes, num_types = 32, 16, 8, 8

    key = jax.random.PRNGKey(0)
    kx, kp = jax.random.split(key)
    x = jax.random.normal(kx, (B, C, H, W), jnp.float32)
    params = init_params(kp, C, in_features, num_classes, num_makes, num_types)

    fc, brand_fc, type_fc = network_v3_forward(x, params)
    jax.block_until_ready((fc, brand_fc, type_fc))

    fc_r, brand_r, type_r = reference_forward(x, params)
    assert fc.shape == (B, num_classes)
    assert brand_fc.shape == (B, num_makes)
    assert type_fc.shape == (B, num_types)
    assert jnp.allclose(fc, fc_r, atol=5e-3, rtol=5e-3)
    assert jnp.allclose(brand_fc, brand_r, atol=5e-3, rtol=5e-3)
    assert jnp.allclose(type_fc, type_r, atol=5e-3, rtol=5e-3)

    print("KERNEL_OK")
</pallas_src>

<mosaic_0001>
module attributes {stable_mosaic.version = 11 : i64} {
  func.func @_fused_kernel(%arg0: i32, %arg1: i32, %arg2: memref<2x256x128xbf16, #tpu.memory_space<vmem>>, %arg3: memref<128x128xbf16, #tpu.memory_space<vmem>>, %arg4: memref<1x128xf32, #tpu.memory_space<vmem>>, %arg5: memref<128x128xbf16, #tpu.memory_space<vmem>>, %arg6: memref<1x128xf32, #tpu.memory_space<vmem>>, %arg7: memref<128x128xbf16, #tpu.memory_space<vmem>>, %arg8: memref<1x128xf32, #tpu.memory_space<vmem>>, %arg9: memref<2x128xf32, #tpu.memory_space<vmem>>, %arg10: memref<2x128xf32, #tpu.memory_space<vmem>>, %arg11: memref<2x128xf32, #tpu.memory_space<vmem>>) attributes {dimension_semantics = [#tpu.dimension_semantics<parallel>, #tpu.dimension_semantics<arbitrary>], iteration_bounds = array<i64: 1, 1>, scalar_prefetch = 0 : i64, scratch_operands = 1 : i64, tpu.core_type = #tpu.core_type<tc>, window_params = [{transform_indices = @transform_0, window_bounds = array<i64: 2, 256, 128>}, {pipeline_mode = #tpu.pipeline_mode<synchronous>, transform_indices = @transform_1, window_bounds = array<i64: 128, 128>}, {pipeline_mode = #tpu.pipeline_mode<synchronous>, transform_indices = @transform_2, window_bounds = array<i64: 1, 128>}, {pipeline_mode = #tpu.pipeline_mode<synchronous>, transform_indices = @transform_3, window_bounds = array<i64: 128, 128>}, {pipeline_mode = #tpu.pipeline_mode<synchronous>, transform_indices = @transform_4, window_bounds = array<i64: 1, 128>}, {pipeline_mode = #tpu.pipeline_mode<synchronous>, transform_indices = @transform_5, window_bounds = array<i64: 128, 128>}, {pipeline_mode = #tpu.pipeline_mode<synchronous>, transform_indices = @transform_6, window_bounds = array<i64: 1, 128>}, {transform_indices = @transform_7, window_bounds = array<i64: 2, 128>}, {transform_indices = @transform_8, window_bounds = array<i64: 2, 128>}]} {
    %c0_i32 = arith.constant 0 : i32
    %0 = arith.cmpi eq, %arg1, %c0_i32 : i32
    %1 = arith.extui %0 : i1 to i32
    %c0_i32_0 = arith.constant 0 : i32
    %2 = arith.cmpi ne, %1, %c0_i32_0 : i32
    scf.if %2 {
      %cst_15 = arith.constant 0.000000e+00 : f32
      %20 = vector.broadcast %cst_15 : f32 to vector<2x128xf32>
      %c0_16 = arith.constant 0 : index
      %c0_17 = arith.constant 0 : index
      %21 = vector.load %arg11[%c0_16, %c0_17] : memref<2x128xf32, #tpu.memory_space<vmem>>, vector<2x128xf32>
      tpu.vector_store %arg11[%c0_16, %c0_17], %20 {strides = array<i32>} : memref<2x128xf32, #tpu.memory_space<vmem>>, vector<2x128xf32>,
    } else {
    }
    %c0 = arith.constant 0 : index
    %c0_1 = arith.constant 0 : index
    %c0_2 = arith.constant 0 : index
    %3 = vector.load %arg2[%c0, %c0_1, %c0_2] : memref<2x256x128xbf16, #tpu.memory_space<vmem>>, vector<2x256x128xbf16>
    %4 = vector.shape_cast %3 : vector<2x256x128xbf16> to vector<512x128xbf16>
    %c0_3 = arith.constant 0 : index
    %c0_4 = arith.constant 0 : index
    %5 = vector.load %arg3[%c0_3, %c0_4] : memref<128x128xbf16, #tpu.memory_space<vmem>>, vector<128x128xbf16>
    %cst = arith.constant dense<0.000000e+00> : vector<512x128xf32>
    %6 = tpu.matmul %4, %5, %cst {dimension_numbers = #tpu.dot_dimension_numbers<[1], [0], [0], [1], [0, 0, 1, 1], [], []>} : vector<512x128xbf16>, vector<128x128xbf16>, vector<512x128xf32> -> vector<512x128xf32>
    %c0_5 = arith.constant 0 : index
    %c0_6 = arith.constant 0 : index
    %7 = vector.load %arg4[%c0_5, %c0_6] : memref<1x128xf32, #tpu.memory_space<vmem>>, vector<1x128xf32>
    %8 = vector.broadcast %7 : vector<1x128xf32> to vector<512x128xf32>
    %9 = arith.addf %6, %8 : vector<512x128xf32>
    %cst_7 = arith.constant 0.000000e+00 : f32
    %10 = vector.broadcast %cst_7 : f32 to vector<512x128xf32>
    %11 = arith.maximumf %9, %10 : vector<512x128xf32>
    %12 = vector.shape_cast %11 : vector<512x128xf32> to vector<2x256x128xf32>
    %c0_8 = arith.constant 0 : index
    %c0_9 = arith.constant 0 : index
    %13 = vector.load %arg11[%c0_8, %c0_9] : memref<2x128xf32, #tpu.memory_space<vmem>>, vector<2x128xf32>
    %cst_10 = arith.constant dense<0.000000e+00> : vector<2x128xf32>
    %14 = vector.multi_reduction <add>, %12, %cst_10 [1] : vector<2x256x128xf32> to vector<2x128xf32>
    %15 = arith.addf %13, %14 : vector<2x128xf32>
    %c0_11 = arith.constant 0 : index
    %c0_12 = arith.constant 0 : index
    %16 = vector.load %arg11[%c0_11, %c0_12] : memref<2x128xf32, #tpu.memory_space<vmem>>, vector<2x128xf32>
    tpu.vector_store %arg11[%c0_11, %c0_12], %15 {strides = array<i32>} : memref<2x128xf32, #tpu.memory_space<vmem>>, vector<2x128xf32>,
    %c0_i32_13 = arith.constant 0 : i32
    %17 = arith.cmpi eq, %arg1, %c0_i32_13 : i32
    %18 = arith.extui %17 : i1 to i32
    %c0_i32_14 = arith.constant 0 : i32
    %19 = arith.cmpi ne, %18, %c0_i32_14 : i32
    scf.if %19 {
      %c0_15 = arith.constant 0 : index
      %c0_16 = arith.constant 0 : index
      %20 = vector.load %arg11[%c0_15, %c0_16] : memref<2x128xf32, #tpu.memory_space<vmem>>, vector<2x128xf32>
      %cst_17 = arith.constant 3.906250e-03 : f32
      %21 = vector.broadcast %cst_17 : f32 to vector<2x128xf32>
      %22 = arith.mulf %20, %21 : vector<2x128xf32>
      %23 = arith.truncf %22 : vector<2x128xf32> to vector<2x128xbf16>
      %c0_18 = arith.constant 0 : index
      %c0_19 = arith.constant 0 : index
      %24 = vector.load %arg5[%c0_18, %c0_19] : memref<128x128xbf16, #tpu.memory_space<vmem>>, vector<128x128xbf16>
      %cst_20 = arith.constant dense<0.000000e+00> : vector<2x128xf32>
      %25 = tpu.matmul %23, %24, %cst_20 {dimension_numbers = #tpu.dot_dimension_numbers<[1], [0], [0], [1], [0, 0, 1, 1], [], []>} : vector<2x128xbf16>, vector<128x128xbf16>, vector<2x128xf32> -> vector<2x128xf32>
      %c0_21 = arith.constant 0 : index
      %c0_22 = arith.constant 0 : index
      %26 = vector.load %arg6[%c0_21, %c0_22] : memref<1x128xf32, #tpu.memory_space<vmem>>, vector<1x128xf32>
      %27 = vector.broadcast %26 : vector<1x128xf32> to vector<2x128xf32>
      %28 = arith.addf %25, %27 : vector<2x128xf32>
      %c0_23 = arith.constant 0 : index
      %c0_24 = arith.constant 0 : index
      %29 = vector.load %arg9[%c0_23, %c0_24] : memref<2x128xf32, #tpu.memory_space<vmem>>, vector<2x128xf32>
      tpu.vector_store %arg9[%c0_23, %c0_24], %28 {strides = array<i32>} : memref<2x128xf32, #tpu.memory_space<vmem>>, vector<2x128xf32>,
      %cst_25 = arith.constant 0.000000e+00 : f32
      %30 = vector.broadcast %cst_25 : f32 to vector<2x128xf32>
      %31 = arith.maximumf %28, %30 : vector<2x128xf32>
      %32 = arith.truncf %31 : vector<2x128xf32> to vector<2x128xbf16>
      %c0_26 = arith.constant 0 : index
      %c0_27 = arith.constant 0 : index
      %33 = vector.load %arg7[%c0_26, %c0_27] : memref<128x128xbf16, #tpu.memory_space<vmem>>, vector<128x128xbf16>
      %cst_28 = arith.constant dense<0.000000e+00> : vector<2x128xf32>
      %34 = tpu.matmul %32, %33, %cst_28 {dimension_numbers = #tpu.dot_dimension_numbers<[1], [0], [0], [1], [0, 0, 1, 1], [], []>} : vector<2x128xbf16>, vector<128x128xbf16>, vector<2x128xf32> -> vector<2x128xf32>
      %c0_29 = arith.constant 0 : index
      %c0_30 = arith.constant 0 : index
      %35 = vector.load %arg8[%c0_29, %c0_30] : memref<1x128xf32, #tpu.memory_space<vmem>>, vector<1x128xf32>
      %36 = vector.broadcast %35 : vector<1x128xf32> to vector<2x128xf32>
      %37 = arith.addf %34, %36 : vector<2x128xf32>
      %c0_31 = arith.constant 0 : index
      %c0_32 = arith.constant 0 : index
      %38 = vector.load %arg10[%c0_31, %c0_32] : memref<2x128xf32, #tpu.memory_space<vmem>>, vector<2x128xf32>
      tpu.vector_store %arg10[%c0_31, %c0_32], %37 {strides = array<i32>} : memref<2x128xf32, #tpu.memory_space<vmem>>, vector<2x128xf32>,
    } else {
    }
    return
  }
  func.func @transform_0(%arg0: i32, %arg1: i32) -> (i32, i32, i32) {
    %c0_i32 = arith.constant 0 : i32
    %c0_i32_0 = arith.constant 0 : i32
    return %arg0, %arg1, %c0_i32 : i32, i32, i32
  }
  func.func @transform_1(%arg0: i32, %arg1: i32) -> (i32, i32) {
    %c0_i32 = arith.constant 0 : i32
    %c0_i32_0 = arith.constant 0 : i32
    %c0_i32_1 = arith.constant 0 : i32
    return %c0_i32, %c0_i32_0 : i32, i32
  }
  func.func @transform_2(%arg0: i32, %arg1: i32) -> (i32, i32) {
    %c0_i32 = arith.constant 0 : i32
    %c0_i32_0 = arith.constant 0 : i32
    %c0_i32_1 = arith.constant 0 : i32
    return %c0_i32, %c0_i32_0 : i32, i32
  }
  func.func @transform_3(%arg0: i32, %arg1: i32) -> (i32, i32) {
    %c0_i32 = arith.constant 0 : i32
    %c0_i32_0 = arith.constant 0 : i32
    %c0_i32_1 = arith.constant 0 : i32
    return %c0_i32, %c0_i32_0 : i32, i32
  }
  func.func @transform_4(%arg0: i32, %arg1: i32) -> (i32, i32) {
    %c0_i32 = arith.constant 0 : i32
    %c0_i32_0 = arith.constant 0 : i32
    %c0_i32_1 = arith.constant 0 : i32
    return %c0_i32, %c0_i32_0 : i32, i32
  }
  func.func @transform_5(%arg0: i32, %arg1: i32) -> (i32, i32) {
    %c0_i32 = arith.constant 0 : i32
    %c0_i32_0 = arith.constant 0 : i32
    %c0_i32_1 = arith.constant 0 : i32
    return %c0_i32, %c0_i32_0 : i32, i32
  }
  func.func @transform_6(%arg0: i32, %arg1: i32) -> (i32, i32) {
    %c0_i32 = arith.constant 0 : i32
    %c0_i32_0 = arith.constant 0 : i32
    %c0_i32_1 = arith.constant 0 : i32
    return %c0_i32, %c0_i32_0 : i32, i32
  }
  func.func @transform_7(%arg0: i32, %arg1: i32) -> (i32, i32) {
    %c0_i32 = arith.constant 0 : i32
    %c0_i32_0 = arith.constant 0 : i32
    return %arg0, %c0_i32 : i32, i32
  }
  func.func @transform_8(%arg0: i32, %arg1: i32) -> (i32, i32) {
    %c0_i32 = arith.constant 0 : i32
    %c0_i32_0 = arith.constant 0 : i32
    return %arg0, %c0_i32 : i32, i32
  }
}

module attributes {stable_mosaic.version = 11 : i64} {
  func.func @_fused_kernel(%arg0: i32, %arg1: i32, %arg2: memref<2x256x128xbf16, #tpu.memory_space<vmem>>, %arg3: memref<128x128xbf16, #tpu.memory_space<vmem>>, %arg4: memref<1x128xf32, #tpu.memory_space<vmem>>, %arg5: memref<128x128xbf16, #tpu.memory_space<vmem>>, %arg6: memref<1x128xf32, #tpu.memory_space<vmem>>, %arg7: memref<128x128xbf16, #tpu.memory_space<vmem>>, %arg8: memref<1x128xf32, #tpu.memory_space<vmem>>, %arg9: memref<2x128xf32, #tpu.memory_space<vmem>>, %arg10: memref<2x128xf32, #tpu.memory_space<vmem>>, %arg11: memref<2x128xf32, #tpu.memory_space<vmem>>) attributes {dimension_semantics = [#tpu.dimension_semantics<parallel>, #tpu.dimension_semantics<arbitrary>], iteration_bounds = array<i64: 1, 1>, scalar_prefetch = 0 : i64, scratch_operands = 1 : i64, tpu.core_type = #tpu.core_type<tc>, window_params = [{transform_indices = @transform_0, window_bounds = array<i64: 2, 256, 128>}, {pipeline_mode = #tpu.pipeline_mode<synchronous>, transform_indices = @transform_1, window_bounds = array<i64: 128, 128>}, {pipeline_mode = #tpu.pipeline_mode<synchronous>, transform_indices = @transform_2, window_bounds = array<i64: 1, 128>}, {pipeline_mode = #tpu.pipeline_mode<synchronous>, transform_indices = @transform_3, window_bounds = array<i64: 128, 128>}, {pipeline_mode = #tpu.pipeline_mode<synchronous>, transform_indices = @transform_4, window_bounds = array<i64: 1, 128>}, {pipeline_mode = #tpu.pipeline_mode<synchronous>, transform_indices = @transform_5, window_bounds = array<i64: 128, 128>}, {pipeline_mode = #tpu.pipeline_mode<synchronous>, transform_indices = @transform_6, window_bounds = array<i64: 1, 128>}, {transform_indices = @transform_7, window_bounds = array<i64: 2, 128>}, {transform_indices = @transform_8, window_bounds = array<i64: 2, 128>}]} {
    %c0_i32 = arith.constant 0 : i32
    %0 = arith.cmpi eq, %arg1, %c0_i32 : i32
    %1 = arith.extui %0 : i1 to i32
    %c0_i32_0 = arith.constant 0 : i32
    %2 = arith.cmpi ne, %1, %c0_i32_0 : i32
    scf.if %2 {
      %cst_15 = arith.constant 0.000000e+00 : f32
      %20 = vector.broadcast %cst_15 : f32 to vector<2x128xf32>
      %c0_16 = arith.constant 0 : index
      %c0_17 = arith.constant 0 : index
      %21 = vector.load %arg11[%c0_16, %c0_17] : memref<2x128xf32, #tpu.memory_space<vmem>>, vector<2x128xf32>
      tpu.vector_store %arg11[%c0_16, %c0_17], %20 {strides = array<i32>} : memref<2x128xf32, #tpu.memory_space<vmem>>, vector<2x128xf32>,
    } else {
    }
    %c0 = arith.constant 0 : index
    %c0_1 = arith.constant 0 : index
    %c0_2 = arith.constant 0 : index
    %3 = vector.load %arg2[%c0, %c0_1, %c0_2] : memref<2x256x128xbf16, #tpu.memory_space<vmem>>, vector<2x256x128xbf16>
    %4 = vector.shape_cast %3 : vector<2x256x128xbf16> to vector<512x128xbf16>
    %c0_3 = arith.constant 0 : index
    %c0_4 = arith.constant 0 : index
    %5 = vector.load %arg3[%c0_3, %c0_4] : memref<128x128xbf16, #tpu.memory_space<vmem>>, vector<128x128xbf16>
    %cst = arith.constant dense<0.000000e+00> : vector<512x128xf32>
    %6 = tpu.matmul %4, %5, %cst {dimension_numbers = #tpu.dot_dimension_numbers<[1], [0], [0], [1], [0, 0, 1, 1], [], []>} : vector<512x128xbf16>, vector<128x128xbf16>, vector<512x128xf32> -> vector<512x128xf32>
    %c0_5 = arith.constant 0 : index
    %c0_6 = arith.constant 0 : index
    %7 = vector.load %arg4[%c0_5, %c0_6] : memref<1x128xf32, #tpu.memory_space<vmem>>, vector<1x128xf32>
    %8 = vector.broadcast %7 : vector<1x128xf32> to vector<512x128xf32>
    %9 = arith.addf %6, %8 : vector<512x128xf32>
    %cst_7 = arith.constant 0.000000e+00 : f32
    %10 = vector.broadcast %cst_7 : f32 to vector<512x128xf32>
    %11 = arith.maximumf %9, %10 : vector<512x128xf32>
    %12 = vector.shape_cast %11 : vector<512x128xf32> to vector<2x256x128xf32>
    %c0_8 = arith.constant 0 : index
    %c0_9 = arith.constant 0 : index
    %13 = vector.load %arg11[%c0_8, %c0_9] : memref<2x128xf32, #tpu.memory_space<vmem>>, vector<2x128xf32>
    %cst_10 = arith.constant dense<0.000000e+00> : vector<2x128xf32>
    %14 = vector.multi_reduction <add>, %12, %cst_10 [1] : vector<2x256x128xf32> to vector<2x128xf32>
    %15 = arith.addf %13, %14 : vector<2x128xf32>
    %c0_11 = arith.constant 0 : index
    %c0_12 = arith.constant 0 : index
    %16 = vector.load %arg11[%c0_11, %c0_12] : memref<2x128xf32, #tpu.memory_space<vmem>>, vector<2x128xf32>
    tpu.vector_store %arg11[%c0_11, %c0_12], %15 {strides = array<i32>} : memref<2x128xf32, #tpu.memory_space<vmem>>, vector<2x128xf32>,
    %c0_i32_13 = arith.constant 0 : i32
    %17 = arith.cmpi eq, %arg1, %c0_i32_13 : i32
    %18 = arith.extui %17 : i1 to i32
    %c0_i32_14 = arith.constant 0 : i32
    %19 = arith.cmpi ne, %18, %c0_i32_14 : i32
    scf.if %19 {
      %c0_15 = arith.constant 0 : index
      %c0_16 = arith.constant 0 : index
      %20 = vector.load %arg11[%c0_15, %c0_16] : memref<2x128xf32, #tpu.memory_space<vmem>>, vector<2x128xf32>
      %cst_17 = arith.constant 3.906250e-03 : f32
      %21 = vector.broadcast %cst_17 : f32 to vector<2x128xf32>
      %22 = arith.mulf %20, %21 : vector<2x128xf32>
      %23 = arith.truncf %22 : vector<2x128xf32> to vector<2x128xbf16>
      %c0_18 = arith.constant 0 : index
      %c0_19 = arith.constant 0 : index
      %24 = vector.load %arg5[%c0_18, %c0_19] : memref<128x128xbf16, #tpu.memory_space<vmem>>, vector<128x128xbf16>
      %cst_20 = arith.constant dense<0.000000e+00> : vector<2x128xf32>
      %25 = tpu.matmul %23, %24, %cst_20 {dimension_numbers = #tpu.dot_dimension_numbers<[1], [0], [0], [1], [0, 0, 1, 1], [], []>} : vector<2x128xbf16>, vector<128x128xbf16>, vector<2x128xf32> -> vector<2x128xf32>
      %c0_21 = arith.constant 0 : index
      %c0_22 = arith.constant 0 : index
      %26 = vector.load %arg6[%c0_21, %c0_22] : memref<1x128xf32, #tpu.memory_space<vmem>>, vector<1x128xf32>
      %27 = vector.broadcast %26 : vector<1x128xf32> to vector<2x128xf32>
      %28 = arith.addf %25, %27 : vector<2x128xf32>
      %c0_23 = arith.constant 0 : index
      %c0_24 = arith.constant 0 : index
      %29 = vector.load %arg9[%c0_23, %c0_24] : memref<2x128xf32, #tpu.memory_space<vmem>>, vector<2x128xf32>
      tpu.vector_store %arg9[%c0_23, %c0_24], %28 {strides = array<i32>} : memref<2x128xf32, #tpu.memory_space<vmem>>, vector<2x128xf32>,
      %cst_25 = arith.constant 0.000000e+00 : f32
      %30 = vector.broadcast %cst_25 : f32 to vector<2x128xf32>
      %31 = arith.maximumf %28, %30 : vector<2x128xf32>
      %32 = arith.truncf %31 : vector<2x128xf32> to vector<2x128xbf16>
      %c0_26 = arith.constant 0 : index
      %c0_27 = arith.constant 0 : index
      %33 = vector.load %arg7[%c0_26, %c0_27] : memref<128x128xbf16, #tpu.memory_space<vmem>>, vector<128x128xbf16>
      %cst_28 = arith.constant dense<0.000000e+00> : vector<2x128xf32>
      %34 = tpu.matmul %32, %33, %cst_28 {dimension_numbers = #tpu.dot_dimension_numbers<[1], [0], [0], [1], [0, 0, 1, 1], [], []>} : vector<2x128xbf16>, vector<128x128xbf16>, vector<2x128xf32> -> vector<2x128xf32>
      %c0_29 = arith.constant 0 : index
      %c0_30 = arith.constant 0 : index
      %35 = vector.load %arg8[%c0_29, %c0_30] : memref<1x128xf32, #tpu.memory_space<vmem>>, vector<1x128xf32>
      %36 = vector.broadcast %35 : vector<1x128xf32> to vector<2x128xf32>
      %37 = arith.addf %34, %36 : vector<2x128xf32>
      %c0_31 = arith.constant 0 : index
      %c0_32 = arith.constant 0 : index
      %38 = vector.load %arg10[%c0_31, %c0_32] : memref<2x128xf32, #tpu.memory_space<vmem>>, vector<2x128xf32>
      tpu.vector_store %arg10[%c0_31, %c0_32], %37 {strides = array<i32>} : memref<2x128xf32, #tpu.memory_space<vmem>>, vector<2x128xf32>,
    } else {
    }
    return
  }
  func.func @transform_0(%arg0: i32, %arg1: i32) -> (i32, i32, i32) {
    %c0_i32 = arith.constant 0 : i32
    %c0_i32_0 = arith.constant 0 : i32
    return %arg0, %arg1, %c0_i32 : i32, i32, i32
  }
  func.func @transform_1(%arg0: i32, %arg1: i32) -> (i32, i32) {
    %c0_i32 = arith.constant 0 : i32
    %c0_i32_0 = arith.constant 0 : i32
    %c0_i32_1 = arith.constant 0 : i32
    return %c0_i32, %c0_i32_0 : i32, i32
  }
  func.func @transform_2(%arg0: i32, %arg1: i32) -> (i32, i32) {
    %c0_i32 = arith.constant 0 : i32
    %c0_i32_0 = arith.constant 0 : i32
    %c0_i32_1 = arith.constant 0 : i32
    return %c0_i32, %c0_i32_0 : i32, i32
  }
  func.func @transform_3(%arg0: i32, %arg1: i32) -> (i32, i32) {
    %c0_i32 = arith.constant 0 : i32
    %c0_i32_0 = arith.constant 0 : i32
    %c0_i32_1 = arith.constant 0 : i32
    return %c0_i32, %c0_i32_0 : i32, i32
  }
  func.func @transform_4(%arg0: i32, %arg1: i32) -> (i32, i32) {
    %c0_i32 = arith.constant 0 : i32
    %c0_i32_0 = arith.constant 0 : i32
    %c0_i32_1 = arith.constant 0 : i32
    return %c0_i32, %c0_i32_0 : i32, i32
  }
  func.func @transform_5(%arg0: i32, %arg1: i32) -> (i32, i32) {
    %c0_i32 = arith.constant 0 : i32
    %c0_i32_0 = arith.constant 0 : i32
    %c0_i32_1 = arith.constant 0 : i32
    return %c0_i32, %c0_i32_0 : i32, i32
  }
  func.func @transform_6(%arg0: i32, %arg1: i32) -> (i32, i32) {
    %c0_i32 = arith.constant 0 : i32
    %c0_i32_0 = arith.constant 0 : i32
    %c0_i32_1 = arith.constant 0 : i32
    return %c0_i32, %c0_i32_0 : i32, i32
  }
  func.func @transform_7(%arg0: i32, %arg1: i32) -> (i32, i32) {
    %c0_i32 = arith.constant 0 : i32
    %c0_i32_0 = arith.constant 0 : i32
    return %arg0, %c0_i32 : i32, i32
  }
  func.func @transform_8(%arg0: i32, %arg1: i32) -> (i32, i32) {
    %c0_i32 = arith.constant 0 : i32
    %c0_i32_0 = arith.constant 0 : i32
    return %arg0, %c0_i32 : i32, i32
  }
}

</mosaic_0001>

<bundles_post_ra>
// kernel: tpu_custom_call.1
= control target key start
LH: loop header
LB: loop body
LE: loop exit
PB: predicated region body
PF: predicated region fallthrough
CT: control target
= control target key end

     0   :  { %14 = vsyncpa [#allocation4], 0  ;;  %s1666_s0 = inlined_call_operand.hbm [shape: bf16[2,256,128], index: 0, kind: input, shape index: {}]   ;;  %s1667_s1 = inlined_call_operand.hbm [shape: bf16[128,128], index: 1, kind: input, shape index: {}]   ;;  %s1668_s2 = inlined_call_operand.vmem [shape: f32[1,128], index: 2, kind: input, shape index: {}]   ;;  %s1669_s3 = inlined_call_operand.hbm [shape: bf16[128,128], index: 3, kind: input, shape index: {}]   ;;  %s1670_s4 = inlined_call_operand.vmem [shape: f32[1,128], index: 4, kind: input, shape index: {}]   ;;  %s1671_s5 = inlined_call_operand.hbm [shape: bf16[128,128], index: 5, kind: input, shape index: {}]   ;;  %s1672_s6 = inlined_call_operand.vmem [shape: f32[1,128], index: 6, kind: input, shape index: {}]   ;;  %s1673_s7 = inlined_call_operand.hbm [shape: f32[2,128], index: 7, kind: output, shape index: {0}]   ;;  %s1674_s8 = inlined_call_operand.hbm [shape: f32[2,128], index: 8, kind: output, shape index: {1}]  }
   0x1   :  { %15 = vsyncpa [#allocation7], 0 }
   0x2   :  { %16 = vsyncpa [#allocation10], 0 }
   0x3   :  { %17 = vsyncpa [#allocation5], 0 }
   0x4   :  { %18 = vsyncpa [#allocation13], 0  ;;  %s36_s29 = sshll.u32 %s1667_s1, 4  ;;  %s1414_s30 = smov [#allocation6]   ;;  %s37_s29 = int_to_ptr.hbm [resolvable:$true] %s36_s29 }
   0x5   :  { %s38_s9 = sshll.u32 %s1414_s30, 4  ;;  %s23_s12 = sshll.u32 %s1666_s0, 4  ;;  %s39_s9 = int_to_ptr.vmem [resolvable:$true] %s38_s9  ;;  %s24_s12 = int_to_ptr.hbm [resolvable:$true] %s23_s12 }
   0x6   :  { %s1415_s13 = smov 64   ;;  %s1416_s14 = smov 4  }
   0x7   :  { %44 = dma.hbm_to_vmem [thread:$0]  %s37_s29, 1024, %s39_s9, [#allocation7], %s1415_s13, %s1415_s13, %s1416_s14  }
   0x8   :  { %s1417_s15 = smov [#allocation3]   ;;  %s51_s19 = sshll.u32 %s1669_s3, 4  ;;  %s52_s19 = int_to_ptr.hbm [resolvable:$true] %s51_s19 }
   0x9   :  { %s25_s16 = sshll.u32 %s1417_s15, 4  ;;  %s66_s21 = sshll.u32 %s1671_s5, 4  ;;  %s26_s16 = int_to_ptr.vmem [resolvable:$true] %s25_s16  ;;  %s67_s21 = int_to_ptr.hbm [resolvable:$true] %s66_s21 }
   0xa   :  { %31 = dma.hbm_to_vmem [thread:$0]  %s24_s12, 4096, %s26_s16, [#allocation4], %s1415_s13, %s1415_s13, %s1416_s14  }
   0xb   :  { %s1418_s22 = smov [#allocation8]   ;;  %s1419_s0 = smov [#allocation9]  }
   0xc   :  { %s53_s23 = sshll.u32 %s1418_s22, 4  ;;  %s68_s24 = sshll.u32 %s1419_s0, 4  ;;  %s54_s23 = int_to_ptr.vmem [resolvable:$true] %s53_s23  ;;  %s69_s24 = int_to_ptr.vmem [resolvable:$true] %s68_s24 }
   0xd   :  { %59 = dma.hbm_to_vmem [thread:$0]  %s52_s19, 1024, %s54_s23, [#allocation7], %s1415_s13, %s1415_s13, %s1416_s14  }
   0xe   :  { %74 = dma.hbm_to_vmem [thread:$0]  %s67_s21, 1024, %s69_s24, [#allocation10], %s1415_s13, %s1415_s13, %s1416_s14  }
   0xf   :  { %1404 = dma.done.wait [#allocation4], 4096  }
  0x10   :  { %1405 = vsyncadd [#allocation4], 4294963200 }
  0x11   :  { %1406 = dma.done.wait [#allocation7], 2048  }
  0x12   :  { %1407 = vsyncadd [#allocation7], 4294965248 }
  0x13   :  { %1408 = dma.done.wait [#allocation10], 1024  }
  0x14   :  { %1409 = vsyncadd [#allocation10], 4294966272  ;;  %v1207_v0 = vld [vmem:[#allocation6 + $0x38] sm:$0xff]  ;;  %v1206_v1 = vld [vmem:[#allocation6 + $0x30] sm:$0xff]  ;;  %vm732_vm0 = vcmask 1041409   ;;  %s1421_s26 = smov [#allocation11]  }
  0x15   :  { %422 = vmatpush.bf16.msra.mxu0 %v1207_v0  ;;  %1224 = vmatpush.bf16.msra.mxu1 %v1207_v0  ;;  %v1205_v2 = vld [vmem:[#allocation6 + $0x28] sm:$0xff]  ;;  %v1204_v3 = vld [vmem:[#allocation6 + $0x20] sm:$0xff]  ;;  %v1203_v4 = vld [vmem:[#allocation6 + $0x18] sm:$0xff]  ;;  %s914_s27 = sshll.u32 %s1421_s26, 4  ;;  %s916_s30 = sshll.u32 %s1673_s7, 4  ;;  %s915_s27 = int_to_ptr.vmem [resolvable:$true] %s914_s27  ;;  %s917_s30 = int_to_ptr.hbm [resolvable:$true] %s916_s30 }
  0x16   :  { %1226 = vmatpush.bf16.msra.mxu3 %v1207_v0  ;;  %1225 = vmatpush.bf16.msra.mxu2 %v1207_v0  ;;  %v1202_v5 = vld [vmem:[#allocation6 + $0x10] sm:$0xff]  ;;  %v1201_v6 = vld [vmem:[#allocation6 + $0x8] sm:$0xff]  ;;  %v1200_v7 = vld [vmem:[#allocation6] sm:$0xff]  ;;  %s927_s14 = sshll.u32 %s1674_s8, 4  ;;  %s928_s14 = int_to_ptr.hbm [resolvable:$true] %s927_s14 }
  0x17   :  { %v1168_v8 = vld [vmem:[#allocation3] sm:$0xff]  ;;  %v1177_v9 = vld [vmem:[#allocation3 + $0x48] sm:$0xff]  ;;  %v1191_v10 = vld [vmem:[#allocation3 + $0xb8] sm:$0xff] }
  0x18   :  { %v1185_v11 = vld [vmem:[#allocation3 + $0x88] sm:$0xff]  ;;  %v1178_v13 = vld [vmem:[#allocation3 + $0x50] sm:$0xff]  ;;  %v1192_v14 = vld [vmem:[#allocation3 + $0xc0] sm:$0xff] }
  0x19   :  { %423 = vmatpush.bf16.msra.mxu0 %v1206_v1  ;;  %1227 = vmatpush.bf16.msra.mxu1 %v1206_v1  ;;  %v1169_v12 = vld [vmem:[#allocation3 + $0x8] sm:$0xff]  ;;  %v1186_v15 = vld [vmem:[#allocation3 + $0x90] sm:$0xff]  ;;  %v1179_v17 = vld [vmem:[#allocation3 + $0x58] sm:$0xff] }
  0x1a   :  { %1229 = vmatpush.bf16.msra.mxu3 %v1206_v1  ;;  %1228 = vmatpush.bf16.msra.mxu2 %v1206_v1  ;;  %v1170_v16 = vld [vmem:[#allocation3 + $0x10] sm:$0xff]  ;;  %v1193_v18 = vld [vmem:[#allocation3 + $0xc8] sm:$0xff]  ;;  %v1187_v19 = vld [vmem:[#allocation3 + $0x98] sm:$0xff] }
  0x1b   :  { %v1171_v20 = vld [vmem:[#allocation3 + $0x18] sm:$0xff]  ;;  %v1180_v21 = vld [vmem:[#allocation3 + $0x60] sm:$0xff]  ;;  %v1194_v22 = vld [vmem:[#allocation3 + $0xd0] sm:$0xff] }
  0x1c   :  { %v1188_v23 = vld [vmem:[#allocation3 + $0xa0] sm:$0xff]  ;;  %v1181_v25 = vld [vmem:[#allocation3 + $0x68] sm:$0xff]  ;;  %v1195_v26 = vld [vmem:[#allocation3 + $0xd8] sm:$0xff] }
  0x1d   :  { %424 = vmatpush.bf16.msra.mxu0 %v1205_v2  ;;  %1230 = vmatpush.bf16.msra.mxu1 %v1205_v2  ;;  %v1172_v24 = vld [vmem:[#allocation3 + $0x20] sm:$0xff]  ;;  %v1189_v27 = vld [vmem:[#allocation3 + $0xa8] sm:$0xff]  ;;  %v1182_v29 = vld [vmem:[#allocation3 + $0x70] sm:$0xff] }
  0x1e   :  { %1232 = vmatpush.bf16.msra.mxu3 %v1205_v2  ;;  %1231 = vmatpush.bf16.msra.mxu2 %v1205_v2  ;;  %v1173_v28 = vld [vmem:[#allocation3 + $0x28] sm:$0xff]  ;;  %v1196_v30 = vld [vmem:[#allocation3 + $0xe0] sm:$0xff]  ;;  %v1190_v31 = vld [vmem:[#allocation3 + $0xb0] sm:$0xff] }
  0x1f   :  { %v1174_v32 = vld [vmem:[#allocation3 + $0x30] sm:$0xff]  ;;  %v1183_v33 = vld [vmem:[#allocation3 + $0x78] sm:$0xff]  ;;  %v1197_v34 = vld [vmem:[#allocation3 + $0xe8] sm:$0xff] }
  0x20   :  { %v1175_v35 = vld [vmem:[#allocation3 + $0x38] sm:$0xff]  ;;  %v1184_v36 = vld [vmem:[#allocation3 + $0x80] sm:$0xff]  ;;  %v1198_v37 = vld [vmem:[#allocation3 + $0xf0] sm:$0xff] }
  0x21   :  { %425 = vmatpush.bf16.msra.mxu0 %v1204_v3  ;;  %1233 = vmatpush.bf16.msra.mxu1 %v1204_v3  ;;  %v1176_v38 = vld [vmem:[#allocation3 + $0x40] sm:$0xff]  ;;  %v1199_v41 = vld [vmem:[#allocation3 + $0xf8] sm:$0xff] }
  0x22   :  { %1235 = vmatpush.bf16.msra.mxu3 %v1204_v3  ;;  %1234 = vmatpush.bf16.msra.mxu2 %v1204_v3  ;;  %v1485_v42 = vld [vmem:[%s1668_s2] ss:$0 sm:$0xff] }
  0x25   :  { %426 = vmatpush.bf16.msra.mxu0 %v1203_v4  ;;  %1236 = vmatpush.bf16.msra.mxu1 %v1203_v4 }
  0x26   :  { %1238 = vmatpush.bf16.msra.mxu3 %v1203_v4  ;;  %1237 = vmatpush.bf16.msra.mxu2 %v1203_v4 }
  0x29   :  { %427 = vmatpush.bf16.msra.mxu0 %v1202_v5  ;;  %1239 = vmatpush.bf16.msra.mxu1 %v1202_v5 }
  0x2a   :  { %1241 = vmatpush.bf16.msra.mxu3 %v1202_v5  ;;  %1240 = vmatpush.bf16.msra.mxu2 %v1202_v5 }
  0x2d   :  { %428 = vmatpush.bf16.msra.mxu0 %v1201_v6  ;;  %1242 = vmatpush.bf16.msra.mxu1 %v1201_v6 }
  0x2e   :  { %1244 = vmatpush.bf16.msra.mxu3 %v1201_v6  ;;  %1243 = vmatpush.bf16.msra.mxu2 %v1201_v6 }
  0x31   :  { %429 = vmatpush.bf16.msra.mxu0 %v1200_v7  ;;  %1245 = vmatpush.bf16.msra.mxu1 %v1200_v7 }
  0x32   :  { %1247 = vmatpush.bf16.msra.mxu3 %v1200_v7  ;;  %1246 = vmatpush.bf16.msra.mxu2 %v1200_v7 }
  0x34   :  { %430 = vmatmul.bf16.vlgmr.msra.gmra.mxu0 %v1168_v8  ;;  %475 = vmatmul.bf16.vlgmr.msra.gmra.mxu1 %v1177_v9 }
  0x35   :  { %545 = vmatmul.bf16.vlgmr.msra.gmra.mxu3 %v1191_v10  ;;  %515 = vmatmul.bf16.vlgmr.msra.gmra.mxu2 %v1185_v11 }
  0x44   :  { %435 = vmatmul.bf16.gmra.mxu0 %v1169_v12  ;;  %480 = vmatmul.bf16.gmra.mxu1 %v1178_v13 }
  0x45   :  { %550 = vmatmul.bf16.gmra.mxu3 %v1192_v14  ;;  %520 = vmatmul.bf16.gmra.mxu2 %v1186_v15 }
  0x54   :  { %440 = vmatmul.bf16.gmra.mxu0 %v1170_v16  ;;  %485 = vmatmul.bf16.gmra.mxu1 %v1179_v17 }
  0x55   :  { %555 = vmatmul.bf16.gmra.mxu3 %v1193_v18  ;;  %525 = vmatmul.bf16.gmra.mxu2 %v1187_v19  ;;  %v1215_v19 = vld [vmem:[#allocation8 + $0x38] sm:$0xff] }
  0x56   :  { %811 = vmatpush.bf16.msrb.mxu1 %v1215_v19 }
  0x64   :  { %445 = vmatmul.bf16.gmra.mxu0 %v1171_v20  ;;  %490 = vmatmul.bf16.gmra.mxu1 %v1180_v21 }
  0x65   :  { %560 = vmatmul.bf16.gmra.mxu3 %v1194_v22  ;;  %530 = vmatmul.bf16.gmra.mxu2 %v1188_v23 }
  0x74   :  { %450 = vmatmul.bf16.gmra.mxu0 %v1172_v24  ;;  %495 = vmatmul.bf16.gmra.mxu1 %v1181_v25 }
  0x75   :  { %565 = vmatmul.bf16.gmra.mxu3 %v1195_v26  ;;  %535 = vmatmul.bf16.gmra.mxu2 %v1189_v27 }
  0x84   :  { %455 = vmatmul.bf16.gmra.mxu0 %v1173_v28  ;;  %500 = vmatmul.bf16.gmra.mxu1 %v1182_v29  ;;  %v1214_v28 = vld [vmem:[#allocation8 + $0x30] sm:$0xff] }
  0x85   :  { %570 = vmatmul.bf16.gmra.mxu3 %v1196_v30  ;;  %540 = vmatmul.bf16.gmra.mxu2 %v1190_v31 }
  0x86   :  { %812 = vmatpush.bf16.msrb.mxu1 %v1214_v28 }
  0x94   :  { %460 = vmatmul.bf16.gmra.mxu0 %v1174_v32  ;;  %505 = vmatmul.bf16.gmra.mxu1 %v1183_v33 }
  0x95   :  { %575 = vmatmul.bf16.gmra.mxu3 %v1197_v34 }
  0xa4   :  { %465 = vmatmul.bf16.gmra.mxu0 %v1175_v35  ;;  %510 = vmatmul.bf16.gmra.mxu1 %v1184_v36  ;;  %v1213_v36 = vld [vmem:[#allocation8 + $0x28] sm:$0xff] }
  0xa5   :  { %580 = vmatmul.bf16.gmra.mxu3 %v1198_v37  ;;  %813 = vmatpush.bf16.msrb.mxu1 %v1213_v36 }
  0xb1   :  { %v431_v39 = vpop.f32.mrf.mxu0  ;;  %v1480_v40 = vpop.f32.mrf.mxu1 }
  0xb2   :  { %v432_v43 = vadd.f32 %v1485_v42, %v431_v39 }
  0xb4   :  { %470 = vmatmul.bf16.gmra.mxu0 %v1176_v38  ;;  %v591_v47 = vmax.f32 %v432_v43, 0.0 }
  0xb5   :  { %585 = vmatmul.bf16.gmra.mxu3 %v1199_v41 }
  0xb8   :  { %v1488_v44 = vpop.f32.mrf.mxu3  ;;  %v1503_v63 = vpop.f32.mrf.mxu2 }
  0xb9   :  { %v433_v45 = vpop.f32.mrf.mxu0  ;;  %v1490_v46 = vpop.f32.mrf.mxu1 }
  0xba   :  { %v434_v48 = vadd.f32 %v1485_v42, %v433_v45 }
  0xbc   :  { %v592_v49 = vmax.f32 %v434_v48, 0.0 }
  0xbe   :  { %v656_v50 = vadd.f32 %v592_v49, %v591_v47 }
  0xc0   :  { %v1493_v51 = vpop.f32.mrf.mxu3  ;;  %v1510_v6 = vpop.f32.mrf.mxu2 }
  0xc1   :  { %v436_v52 = vpop.f32.mrf.mxu0  ;;  %v1495_v53 = vpop.f32.mrf.mxu1 }
  0xc2   :  { %v437_v54 = vadd.f32 %v1485_v42, %v436_v52 }
  0xc4   :  { %v593_v55 = vmax.f32 %v437_v54, 0.0 }
  0xc6   :  { %v657_v56 = vadd.f32 %v656_v50, %v593_v55 }
  0xc8   :  { %v1501_v60 = vpop.f32.mrf.mxu3  ;;  %v521_v16 = vpop.f32.mrf.mxu2 }
  0xc9   :  { %v438_v57 = vpop.f32.mrf.mxu0  ;;  %v1498_v58 = vpop.f32.mrf.mxu1 }
  0xca   :  { %v439_v59 = vadd.f32 %v1485_v42, %v438_v57 }
  0xcc   :  { %v594_v61 = vmax.f32 %v439_v59, 0.0  ;;  %v1212_v59 = vld [vmem:[#allocation8 + $0x20] sm:$0xff] }
  0xcd   :  { %814 = vmatpush.bf16.msrb.mxu1 %v1212_v59 }
  0xce   :  { %v658_v62 = vadd.f32 %v657_v56, %v594_v61 }
  0xd0   :  { %v1508_v4 = vpop.f32.mrf.mxu3  ;;  %v523_v23 = vpop.f32.mrf.mxu2 }
  0xd1   :  { %v441_v0 = vpop.f32.mrf.mxu0  ;;  %v1505_v1 = vpop.f32.mrf.mxu1 }
  0xd2   :  { %v442_v2 = vadd.f32 %v1485_v42, %v441_v0 }
  0xd4   :  { %v595_v3 = vmax.f32 %v442_v2, 0.0 }
  0xd6   :  { %v659_v5 = vadd.f32 %v658_v62, %v595_v3 }
  0xd8   :  { %v1515_v12 = vpop.f32.mrf.mxu3  ;;  %v1528_v27 = vpop.f32.mrf.mxu2 }
  0xd9   :  { %v443_v7 = vpop.f32.mrf.mxu0  ;;  %v1512_v8 = vpop.f32.mrf.mxu1 }
  0xda   :  { %v444_v9 = vadd.f32 %v1485_v42, %v443_v7 }
  0xdc   :  { %v596_v10 = vmax.f32 %v444_v9, 0.0  ;;  %v517_v9 = vadd.f32 %v1485_v42, %v1503_v63  ;;  %v522_v63 = vadd.f32 %v1485_v42, %v521_v16 }
  0xde   :  { %v660_v11 = vadd.f32 %v659_v5, %v596_v10 }
  0xe0   :  { %v1520_v20 = vpop.f32.mrf.mxu3  ;;  %v1534_v32 = vpop.f32.mrf.mxu2 }
  0xe1   :  { %v446_v13 = vpop.f32.mrf.mxu0  ;;  %v1517_v14 = vpop.f32.mrf.mxu1 }
  0xe2   :  { %v447_v15 = vadd.f32 %v1485_v42, %v446_v13 }
  0xe4   :  { %v597_v17 = vmax.f32 %v447_v15, 0.0 }
  0xe6   :  { %v661_v18 = vadd.f32 %v660_v11, %v597_v17 }
  0xe8   :  { %v1526_v26 = vpop.f32.mrf.mxu3  ;;  %v531_v39 = vpop.f32.mrf.mxu2 }
  0xe9   :  { %v448_v21 = vpop.f32.mrf.mxu0  ;;  %v1522_v22 = vpop.f32.mrf.mxu1 }
  0xea   :  { %v449_v54 = vadd.f32 %v1485_v42, %v448_v21  ;;  %v519_v21 = vadd.f32 %v1485_v42, %v1510_v6 }
  0xec   :  { %v598_v61 = vmax.f32 %v449_v54, 0.0  ;;  %v625_v54 = vmax.f32 %v517_v9, 0.0  ;;  %v527_v9 = vadd.f32 %v1485_v42, %v1528_v27 }
  0xee   :  { %v662_v10 = vadd.f32 %v661_v18, %v598_v61  ;;  %v524_v61 = vadd.f32 %v1485_v42, %v523_v23  ;;  %v529_v23 = vadd.f32 %v1485_v42, %v1534_v32  ;;  %v477_v32 = vadd.f32 %v1485_v42, %v1480_v40 }
  0xf0   :  { %v1532_v31 = vpop.f32.mrf.mxu3  ;;  %v1546_v47 = vpop.f32.mrf.mxu2 }
  0xf1   :  { %v451_v24 = vpop.f32.mrf.mxu0  ;;  %v1524_v25 = vpop.f32.mrf.mxu1 }
  0xf2   :  { %v452_v57 = vadd.f32 %v1485_v42, %v451_v24 }
  0xf4   :  { %v599_v2 = vmax.f32 %v452_v57, 0.0 }
  0xf6   :  { %v663_v24 = vadd.f32 %v662_v10, %v599_v2 }
  0xf8   :  { %v1538_v35 = vpop.f32.mrf.mxu3  ;;  %v1552_v52 = vpop.f32.mrf.mxu2 }
  0xf9   :  { %v453_v29 = vpop.f32.mrf.mxu0  ;;  %v1530_v30 = vpop.f32.mrf.mxu1 }
  0xfa   :  { %v454_v0 = vadd.f32 %v1485_v42, %v453_v29 }
  0xfc   :  { %v600_v15 = vmax.f32 %v454_v0, 0.0 }
  0xfe   :  { %v664_v18 = vadd.f32 %v663_v24, %v600_v15 }
 0x100   :  { %v1542_v41 = vpop.f32.mrf.mxu3  ;;  %v538_v7 = vpop.f32.mrf.mxu2 }
 0x101   :  { %v456_v33 = vpop.f32.mrf.mxu0  ;;  %v1536_v34 = vpop.f32.mrf.mxu1 }
 0x102   :  { %v457_v3 = vadd.f32 %v1485_v42, %v456_v33 }
 0x104   :  { %v601_v28 = vmax.f32 %v457_v3, 0.0 }
 0x106   :  { %v665_v6 = vadd.f32 %v664_v18, %v601_v28 }
 0x108   :  { %v1550_v50 = vpop.f32.mrf.mxu3 }
 0x109   :  { %v458_v37 = vpop.f32.mrf.mxu0  ;;  %v1540_v38 = vpop.f32.mrf.mxu1 }
 0x10a   :  { %v459_v17 = vadd.f32 %v1485_v42, %v458_v37  ;;  %v626_v37 = vmax.f32 %v519_v21, 0.0 }
 0x110   :  { %v1556_v62 = vpop.f32.mrf.mxu3 }
 0x111   :  { %v461_v43 = vpop.f32.mrf.mxu0  ;;  %v1544_v45 = vpop.f32.mrf.mxu1 }
 0x112   :  { %v462_v29 = vadd.f32 %v1485_v42, %v461_v43 }
 0x114   :  { %v603_v2 = vmax.f32 %v462_v29, 0.0  ;;  %v532_v29 = vadd.f32 %v1485_v42, %v531_v39  ;;  %v537_v39 = vadd.f32 %v1485_v42, %v1552_v52 }
 0x118   :  { %v1571_v0 = vpop.f32.mrf.mxu3 }
 0x119   :  { %v463_v48 = vpop.f32.mrf.mxu0  ;;  %v1548_v49 = vpop.f32.mrf.mxu1 }
 0x11a   :  { %v464_v57 = vadd.f32 %v1485_v42, %v463_v48 }
 0x121   :  { %v466_v55 = vpop.f32.mrf.mxu0  ;;  %v511_v56 = vpop.f32.mrf.mxu1 }
 0x122   :  { %v512_v5 = vadd.f32 %v1485_v42, %v511_v56  ;;  %v602_v56 = vmax.f32 %v459_v17, 0.0  ;;  %v467_v3 = vadd.f32 %v1485_v42, %v466_v55  ;;  %v628_v17 = vmax.f32 %v524_v61, 0.0  ;;  %v1585_v61 = vpop.f32.mrf.mxu3 }
 0x124   :  { %v623_v33 = vmax.f32 %v512_v5, 0.0  ;;  %v627_v5 = vmax.f32 %v522_v63, 0.0  ;;  %v666_v10 = vadd.f32 %v665_v6, %v602_v56  ;;  %v605_v24 = vmax.f32 %v467_v3, 0.0 }
 0x125   :  { %v630_v63 = vmax.f32 %v529_v23, 0.0 }
 0x126   :  { %v667_v21 = vadd.f32 %v666_v10, %v603_v2  ;;  %v609_v10 = vmax.f32 %v477_v32, 0.0  ;;  %v1211_v32 = vld [vmem:[#allocation8 + $0x18] sm:$0xff] }
 0x127   :  { %815 = vmatpush.bf16.msrb.mxu1 %v1211_v32 }
 0x129   :  { %v468_v11 = vpop.f32.mrf.mxu0  ;;  %v513_v13 = vpop.f32.mrf.mxu1 }
 0x12a   :  { %v514_v19 = vadd.f32 %v1485_v42, %v513_v13  ;;  %v604_v13 = vmax.f32 %v464_v57, 0.0  ;;  %v469_v48 = vadd.f32 %v1485_v42, %v468_v11  ;;  %v534_v11 = vadd.f32 %v1485_v42, %v1546_v47 }
 0x12b   :  { %v479_v47 = vadd.f32 %v1485_v42, %v1490_v46  ;;  %v484_v46 = vadd.f32 %v1485_v42, %v1498_v58  ;;  %v549_v58 = vadd.f32 %v1485_v42, %v1493_v51 }
 0x12c   :  { %v624_v36 = vmax.f32 %v514_v19, 0.0  ;;  %v541_v19 = vpop.f32.mrf.mxu2  ;;  %v668_v27 = vadd.f32 %v667_v21, %v604_v13  ;;  %v482_v13 = vadd.f32 %v1485_v42, %v1495_v53  ;;  %v487_v53 = vadd.f32 %v1485_v42, %v1505_v1 }
 0x12d   :  { %v610_v21 = vmax.f32 %v479_v47, 0.0  ;;  %v552_v1 = vadd.f32 %v1485_v42, %v1501_v60  ;;  %v638_v51 = vmax.f32 %v549_v58, 0.0  ;;  %v557_v60 = vadd.f32 %v1485_v42, %v1515_v12 }
 0x12e   :  { %v693_v59 = vadd.f32 %v624_v36, %v623_v33  ;;  %v629_v33 = vmax.f32 %v527_v9, 0.0  ;;  %v606_v36 = vmax.f32 %v469_v48, 0.0  ;;  %v669_v18 = vadd.f32 %v668_v27, %v605_v24 }
 0x12f   :  { %v641_v12 = vmax.f32 %v557_v60, 0.0 }
 0x130   :  { %v694_v43 = vadd.f32 %v693_v59, %v625_v54  ;;  %v631_v59 = vmax.f32 %v532_v29, 0.0  ;;  %v670_v6 = vadd.f32 %v669_v18, %v606_v36  ;;  %v611_v29 = vmax.f32 %v482_v13, 0.0 }
 0x131   :  { %v471_v16 = vpop.f32.mrf.mxu0 }
 0x132   :  { %v695_v15 = vadd.f32 %v694_v43, %v626_v37  ;;  %v472_v55 = vadd.f32 %v1485_v42, %v471_v16  ;;  %v632_v43 = vmax.f32 %v534_v11, 0.0  ;;  %v1607_v11 = vpop.f32.mrf.mxu3 }
 0x134   :  { %v696_v28 = vadd.f32 %v695_v15, %v627_v5  ;;  %v607_v57 = vmax.f32 %v472_v55, 0.0  ;;  %v539_v5 = vadd.f32 %v1485_v42, %v538_v7  ;;  %v543_v48 = vpop.f32.mrf.mxu2  ;;  %v633_v15 = vmax.f32 %v537_v39, 0.0 }
 0x135   :  { %v544_v55 = vadd.f32 %v1485_v42, %v543_v48 }
 0x136   :  { %v697_v54 = vadd.f32 %v696_v28, %v628_v17  ;;  %v671_v16 = vadd.f32 %v670_v6, %v607_v57  ;;  %v542_v17 = vadd.f32 %v1485_v42, %v541_v19  ;;  %v634_v24 = vmax.f32 %v539_v5, 0.0  ;;  %v1210_v5 = vld [vmem:[#allocation8 + $0x10] sm:$0xff] }
 0x137   :  { %v636_v57 = vmax.f32 %v544_v55, 0.0  ;;  %816 = vmatpush.bf16.msrb.mxu1 %v1210_v5 }
 0x138   :  { %v698_v56 = vadd.f32 %v697_v54, %v629_v33  ;;  %v547_v33 = vadd.f32 %v1485_v42, %v1488_v44  ;;  %v635_v36 = vmax.f32 %v542_v17, 0.0  ;;  %v489_v54 = vadd.f32 %v1485_v42, %v1512_v8 }
 0x139   :  { %v473_v37 = vpop.f32.mrf.mxu0 }
 0x13a   :  { %v699_v2 = vadd.f32 %v698_v56, %v630_v63  ;;  %v474_v3 = vadd.f32 %v1485_v42, %v473_v37  ;;  %v612_v63 = vmax.f32 %v484_v46, 0.0  ;;  %v637_v44 = vmax.f32 %v547_v33, 0.0 }
 0x13b   :  { %v492_v37 = vadd.f32 %v1485_v42, %v1517_v14  ;;  %v614_v6 = vmax.f32 %v489_v54, 0.0 }
 0x13c   :  { %v700_v9 = vadd.f32 %v699_v2, %v631_v59  ;;  %v608_v40 = vmax.f32 %v474_v3, 0.0  ;;  %v613_v59 = vmax.f32 %v487_v53, 0.0  ;;  %v554_v2 = vadd.f32 %v1485_v42, %v1508_v4 }
 0x13d   :  { %v494_v3 = vadd.f32 %v1485_v42, %v1522_v22  ;;  %v615_v14 = vmax.f32 %v492_v37, 0.0  ;;  %v559_v22 = vadd.f32 %v1485_v42, %v1520_v20  ;;  %v564_v20 = vadd.f32 %v1485_v42, %v1532_v31 }
 0x13e   :  { %v701_v52 = vadd.f32 %v700_v9, %v632_v43  ;;  %v672_v23 = vadd.f32 %v671_v16, %v608_v40  ;;  %v639_v9 = vmax.f32 %v552_v1, 0.0  ;;  %v1420_v16 = vmov 0.0  }
 0x13f   :  { %97 = vst [vmem:[#allocation2] sm:$0x3] %v1420_v16  ;;  %v497_v40 = vadd.f32 %v1485_v42, %v1524_v25  ;;  %v640_v4 = vmax.f32 %v554_v2, 0.0  ;;  %v616_v48 = vmax.f32 %v494_v3, 0.0  ;;  %v502_v25 = vadd.f32 %v1485_v42, %v1536_v34  ;;  %v1209_v2 = vld [vmem:[#allocation8 + $0x8] sm:$0xff] }
 0x140   :  { %v702_v28 = vadd.f32 %v701_v52, %v633_v15  ;;  %v673_v7 = vadd.f32 %v672_v23, %v609_v10  ;;  %v499_v15 = vadd.f32 %v1485_v42, %v1530_v30  ;;  %v562_v23 = vadd.f32 %v1485_v42, %v1526_v26  ;;  %817 = vmatpush.bf16.msrb.mxu1 %v1209_v2 }
 0x141   :  { %v617_v46 = vmax.f32 %v497_v40, 0.0  ;;  %v504_v30 = vadd.f32 %v1485_v42, %v1540_v38  ;;  %v567_v26 = vadd.f32 %v1485_v42, %v1538_v35  ;;  %v507_v34 = vadd.f32 %v1485_v42, %v1544_v45 }
 0x142   :  { %v703_v27 = vadd.f32 %v702_v28, %v634_v24  ;;  %v674_v19 = vadd.f32 %v673_v7, %v610_v21  ;;  %v583_v21 = vpop.f32.mrf.mxu3  ;;  %v642_v7 = vmax.f32 %v559_v22, 0.0  ;;  %v618_v55 = vmax.f32 %v499_v15, 0.0 }
 0x143   :  { %v643_v53 = vmax.f32 %v562_v23, 0.0  ;;  %v644_v54 = vmax.f32 %v564_v20, 0.0  ;;  %v569_v31 = vadd.f32 %v1485_v42, %v1542_v41  ;;  %v620_v58 = vmax.f32 %v504_v30, 0.0  ;;  %v1220_v30 = vld [vmem:[#allocation9 + $0x20] sm:$0xff] }
 0x144   :  { %v704_v18 = vadd.f32 %v703_v27, %v635_v36  ;;  %v675_v56 = vadd.f32 %v674_v19, %v611_v29  ;;  %v619_v27 = vmax.f32 %v502_v25, 0.0  ;;  %v509_v38 = vadd.f32 %v1485_v42, %v1548_v49 }
 0x145   :  { %v572_v35 = vadd.f32 %v1485_v42, %v1550_v50  ;;  %v646_v45 = vmax.f32 %v569_v31, 0.0  ;;  %v574_v37 = vadd.f32 %v1485_v42, %v1556_v62  ;;  %v577_v49 = vadd.f32 %v1485_v42, %v1571_v0  ;;  %v1217_v31 = vld [vmem:[#allocation9 + $0x8] sm:$0xff] }
 0x146   :  { %v676_v39 = vadd.f32 %v675_v56, %v612_v63  ;;  %v705_v8 = vadd.f32 %v704_v18, %v636_v57  ;;  %v645_v56 = vmax.f32 %v567_v26, 0.0  ;;  %v621_v57 = vmax.f32 %v507_v34, 0.0  ;;  %v655_v26 = vld [vmem:[#allocation2] sm:$0x3] }
 0x147   :  { %v648_v3 = vmax.f32 %v574_v37, 0.0  ;;  %v579_v50 = vadd.f32 %v1485_v42, %v1585_v61  ;;  %v649_v5 = vmax.f32 %v577_v49, 0.0  ;;  %v582_v62 = vadd.f32 %v1485_v42, %v1607_v11 }
 0x148   :  { %v677_v47 = vadd.f32 %v676_v39, %v613_v59  ;;  %v706_v43 = vadd.f32 %v705_v8, %v637_v44  ;;  %v622_v59 = vmax.f32 %v509_v38, 0.0  ;;  %v647_v8 = vmax.f32 %v572_v35, 0.0 }
 0x149   :  { %v650_v60 = vmax.f32 %v579_v50, 0.0 }
 0x14a   :  { %v678_v10 = vadd.f32 %v677_v47, %v614_v6  ;;  %v707_v13 = vadd.f32 %v706_v43, %v638_v51  ;;  %v586_v1 = vpop.f32.mrf.mxu3  ;;  %v1208_v43 = vld [vmem:[#allocation8] sm:$0xff] }
 0x14b   :  { %818 = vmatpush.bf16.msrb.mxu1 %v1208_v43 }
 0x14c   :  { %v679_v52 = vadd.f32 %v678_v10, %v615_v14  ;;  %v708_v17 = vadd.f32 %v707_v13, %v639_v9  ;;  %v584_v14 = vadd.f32 %v1485_v42, %v583_v21  ;;  %v651_v10 = vmax.f32 %v582_v62, 0.0 }
 0x14d   :  { %v587_v13 = vadd.f32 %v1485_v42, %v586_v1  ;;  %v1259_v1 = vld [vmem:[%s1672_s6] ss:$0 sm:$0xff] }
 0x14e   :  { %v680_v24 = vadd.f32 %v679_v52, %v616_v48  ;;  %v709_v28 = vadd.f32 %v708_v17, %v640_v4  ;;  %v652_v22 = vmax.f32 %v584_v14, 0.0 }
 0x14f   :  { %v653_v52 = vmax.f32 %v587_v13, 0.0 }
 0x150   :  { %v681_v29 = vadd.f32 %v680_v24, %v617_v46  ;;  %v710_v33 = vadd.f32 %v709_v28, %v641_v12  ;;  %v1223_v12 = vld [vmem:[#allocation9 + $0x38] sm:$0xff]  ;;  %v1222_v46 = vld [vmem:[#allocation9 + $0x30] sm:$0xff]  ;;  %v1221_v28 = vld [vmem:[#allocation9 + $0x28] sm:$0xff] }
 0x151   :  { %895 = vmatpush.bf16.msrb.mxu2 %v1223_v12 }
 0x152   :  { %v682_v36 = vadd.f32 %v681_v29, %v618_v55  ;;  %v711_v19 = vadd.f32 %v710_v33, %v642_v7  ;;  %v588_v0 = vpop.f32.mrf.mxu3 }
 0x153   :  { %v589_v48 = vadd.f32 %v1485_v42, %v588_v0 }
 0x154   :  { %v683_v63 = vadd.f32 %v682_v36, %v619_v27  ;;  %v712_v18 = vadd.f32 %v711_v19, %v643_v53  ;;  %v1219_v53 = vld [vmem:[#allocation9 + $0x18] sm:$0xff] }
 0x155   :  { %v654_v23 = vmax.f32 %v589_v48, 0.0  ;;  %896 = vmatpush.bf16.msrb.mxu2 %v1222_v46 }
 0x156   :  { %v684_v32 = vadd.f32 %v683_v63, %v620_v58  ;;  %v713_v44 = vadd.f32 %v712_v18, %v644_v54  ;;  %v1218_v54 = vld [vmem:[#allocation9 + $0x10] sm:$0xff]  ;;  %v1216_v58 = vld [vmem:[#allocation9] sm:$0xff] }
 0x158   :  { %v714_v41 = vadd.f32 %v713_v44, %v645_v56  ;;  %v685_v39 = vadd.f32 %v684_v32, %v621_v57  ;;  %v1258_v56 = vld [vmem:[%s1670_s4] ss:$0 sm:$0xff]  ;;  %s1422_s4 = smov [#allocation12]  }
 0x159   :  { %897 = vmatpush.bf16.msrb.mxu2 %v1221_v28  ;;  %s925_s11 = sshll.u32 %s1422_s4, 4  ;;  %s926_s11 = int_to_ptr.vmem [resolvable:$true] %s925_s11 }
 0x15a   :  { %v715_v6 = vadd.f32 %v714_v41, %v646_v45  ;;  %v686_v51 = vadd.f32 %v685_v39, %v622_v59 }
 0x15c   :  { %v716_v47 = vadd.f32 %v715_v6, %v647_v8  ;;  %v687_v4 = vrot.slane %v686_v51, 4 }
 0x15d   :  { %898 = vmatpush.bf16.msrb.mxu2 %v1220_v30 }
 0x15e   :  { %v717_v9 = vadd.f32 %v716_v47, %v648_v3  ;;  %v688_v17 = vadd.f32 %v687_v4, %v686_v51 }
 0x160   :  { %v718_v16 = vadd.f32 %v717_v9, %v649_v5  ;;  %v689_v21 = vrot.slane %v688_v17, 2 }
 0x161   :  { %899 = vmatpush.bf16.msrb.mxu2 %v1219_v53 }
 0x162   :  { %v719_v40 = vadd.f32 %v718_v16, %v650_v60  ;;  %v690_v7 = vadd.f32 %v689_v21, %v688_v17 }
 0x164   :  { %v720_v61 = vadd.f32 %v719_v40, %v651_v10  ;;  %v691_v29 = vrot.slane %v690_v7, 1 }
 0x165   :  { %900 = vmatpush.bf16.msrb.mxu2 %v1218_v54 }
 0x166   :  { %v721_v15 = vadd.f32 %v720_v61, %v652_v22  ;;  %v692_v27 = vadd.f32 %v691_v29, %v690_v7 }
 0x168   :  { %v722_v11 = vadd.f32 %v721_v15, %v653_v52 }
 0x169   :  { %901 = vmatpush.bf16.msrb.mxu2 %v1217_v31 }
 0x16a   :  { %v723_v25 = vadd.f32 %v722_v11, %v654_v23 }
 0x16c   :  { %v724_v24 = vrot.slane %v723_v25, 4 }
 0x16d   :  { %902 = vmatpush.bf16.msrb.mxu2 %v1216_v58 }
 0x16e   :  { %v725_v20 = vadd.f32 %v724_v24, %v723_v25 }
 0x170   :  { %v726_v55 = vrot.slane %v725_v20, 2 }
 0x172   :  { %v727_v42 = vadd.f32 %v726_v55, %v725_v20 }
 0x174   :  { %v728_v33 = vrot.slane %v727_v42, 1 }
 0x176   :  { %v729_v34 = vadd.f32 %v728_v33, %v727_v42 }
 0x178   :  { %v733_v36 = vsel %vm732_vm0, %v729_v34, %v692_v27 }
 0x179   :  { %v735_v19 = vadd.f32 %v733_v36, %v655_v26 }
 0x17b   :  { %736 = vst [vmem:[#allocation2] sm:$0x3] %v735_v19 }
 0x182   :  { %v740_v38 = vld [vmem:[#allocation2] sm:$0x3] }
 0x183   :  { %v741_v63 = vmul.f32 0.00390625, %v740_v38 }
 0x185   :  { %v742_v18 = vpack.c.bf16 %v741_v63, %v741_v63 }
 0x187   :  { %819 = vmatmul.bf16.vlgmr.msrb.gmra.mxu1 %v742_v18 }
 0x204   :  { %v820_v57 = vpop.f32.mrf.mxu1 }
 0x205   :  { %v821_v35 = vadd.f32 %v1258_v56, %v820_v57 }
 0x207   :  { %824 = vst [vmem:[#allocation11] sm:$0x3] %v821_v35  ;;  %v825_v32 = vmax.f32 %v821_v35, 0.0 }
 0x208   :  { %919 = dma.vmem_to_hbm [thread:$0]  %s915_s27, 32, %s917_s30, [#allocation5]  }
 0x209   :  { %v826_v44 = vpack.c.bf16 %v825_v32, %v825_v32 }
 0x20b   :  { %903 = vmatmul.bf16.vlgmr.msrb.gmra.mxu2 %v826_v44 }
 0x20c   :  { %v822_v45 = vpop.f32.mrf.mxu1 }
 0x28e   :  { %v904_v59 = vpop.f32.mrf.mxu2 }
 0x28f   :  { %v905_v37 = vadd.f32 %v1259_v1, %v904_v59 }
 0x291   :  { %908 = vst [vmem:[#allocation12] sm:$0x3] %v905_v37 }
 0x292   :  { %930 = dma.vmem_to_hbm [thread:$0]  %s926_s11, 32, %s928_s14, [#allocation13]  }
 0x296   :  { %v906_v41 = vpop.f32.mrf.mxu2 }
 0x297   :  { %1410 = dma.done.wait [#allocation5], 32  }
 0x298   :  { %1411 = vsyncadd [#allocation5], 4294967264 }
 0x299   :  { %1412 = dma.done.wait [#allocation13], 32  }
 0x29a   :  { %1413 = vsyncadd [#allocation13], 4294967264 }
 0x29b   :  { %939 = vsyncpa [#allocation4], 1 }
 0x29c   :  { %940 = vsyncpa [#allocation7], 1 }
 0x29d   :  { %941 = vsyncpa [#allocation10], 1 }
 0x29e   :  { %942 = vsyncpa [#allocation5], 1 }
 0x29f   :  { %943 = vsyncpa [#allocation13], 1 }

// kernel: tpu_custom_call.1
= control target key start
LH: loop header
LB: loop body
LE: loop exit
PB: predicated region body
PF: predicated region fallthrough
CT: control target
= control target key end

     0   :  { %14 = vsyncpa [#allocation4], 0  ;;  %s1666_s0 = inlined_call_operand.hbm [shape: bf16[2,256,128], index: 0, kind: input, shape index: {}]   ;;  %s1667_s1 = inlined_call_operand.hbm [shape: bf16[128,128], index: 1, kind: input, shape index: {}]   ;;  %s1668_s2 = inlined_call_operand.vmem [shape: f32[1,128], index: 2, kind: input, shape index: {}]   ;;  %s1669_s3 = inlined_call_operand.hbm [shape: bf16[128,128], index: 3, kind: input, shape index: {}]   ;;  %s1670_s4 = inlined_call_operand.vmem [shape: f32[1,128], index: 4, kind: input, shape index: {}]   ;;  %s1671_s5 = inlined_call_operand.hbm [shape: bf16[128,128], index: 5, kind: input, shape index: {}]   ;;  %s1672_s6 = inlined_call_operand.vmem [shape: f32[1,128], index: 6, kind: input, shape index: {}]   ;;  %s1673_s7 = inlined_call_operand.hbm [shape: f32[2,128], index: 7, kind: output, shape index: {0}]   ;;  %s1674_s8 = inlined_call_operand.hbm [shape: f32[2,128], index: 8, kind: output, shape index: {1}]  }
   0x1   :  { %15 = vsyncpa [#allocation7], 0 }
   0x2   :  { %16 = vsyncpa [#allocation10], 0 }
   0x3   :  { %17 = vsyncpa [#allocation5], 0 }
   0x4   :  { %18 = vsyncpa [#allocation13], 0  ;;  %s36_s29 = sshll.u32 %s1667_s1, 4  ;;  %s1414_s30 = smov [#allocation6]   ;;  %s37_s29 = int_to_ptr.hbm [resolvable:$true] %s36_s29 }
   0x5   :  { %s38_s9 = sshll.u32 %s1414_s30, 4  ;;  %s23_s12 = sshll.u32 %s1666_s0, 4  ;;  %s39_s9 = int_to_ptr.vmem [resolvable:$true] %s38_s9  ;;  %s24_s12 = int_to_ptr.hbm [resolvable:$true] %s23_s12 }
   0x6   :  { %s1415_s13 = smov 64   ;;  %s1416_s14 = smov 4  }
   0x7   :  { %44 = dma.hbm_to_vmem [thread:$0]  %s37_s29, 1024, %s39_s9, [#allocation7], %s1415_s13, %s1415_s13, %s1416_s14  }
   0x8   :  { %s1417_s15 = smov [#allocation3]   ;;  %s51_s19 = sshll.u32 %s1669_s3, 4  ;;  %s52_s19 = int_to_ptr.hbm [resolvable:$true] %s51_s19 }
   0x9   :  { %s25_s16 = sshll.u32 %s1417_s15, 4  ;;  %s66_s21 = sshll.u32 %s1671_s5, 4  ;;  %s26_s16 = int_to_ptr.vmem [resolvable:$true] %s25_s16  ;;  %s67_s21 = int_to_ptr.hbm [resolvable:$true] %s66_s21 }
   0xa   :  { %31 = dma.hbm_to_vmem [thread:$0]  %s24_s12, 4096, %s26_s16, [#allocation4], %s1415_s13, %s1415_s13, %s1416_s14  }
   0xb   :  { %s1418_s22 = smov [#allocation8]   ;;  %s1419_s0 = smov [#allocation9]  }
   0xc   :  { %s53_s23 = sshll.u32 %s1418_s22, 4  ;;  %s68_s24 = sshll.u32 %s1419_s0, 4  ;;  %s54_s23 = int_to_ptr.vmem [resolvable:$true] %s53_s23  ;;  %s69_s24 = int_to_ptr.vmem [resolvable:$true] %s68_s24 }
   0xd   :  { %59 = dma.hbm_to_vmem [thread:$0]  %s52_s19, 1024, %s54_s23, [#allocation7], %s1415_s13, %s1415_s13, %s1416_s14  }
   0xe   :  { %74 = dma.hbm_to_vmem [thread:$0]  %s67_s21, 1024, %s69_s24, [#allocation10], %s1415_s13, %s1415_s13, %s1416_s14  }
   0xf   :  { %1404 = dma.done.wait [#allocation4], 4096  }
  0x10   :  { %1405 = vsyncadd [#allocation4], 4294963200 }
  0x11   :  { %1406 = dma.done.wait [#allocation7], 2048  }
  0x12   :  { %1407 = vsyncadd [#allocation7], 4294965248 }
  0x13   :  { %1408 = dma.done.wait [#allocation10], 1024  }
  0x14   :  { %1409 = vsyncadd [#allocation10], 4294966272  ;;  %v1207_v0 = vld [vmem:[#allocation6 + $0x38] sm:$0xff]  ;;  %v1206_v1 = vld [vmem:[#allocation6 + $0x30] sm:$0xff]  ;;  %vm732_vm0 = vcmask 1041409   ;;  %s1421_s26 = smov [#allocation11]  }
  0x15   :  { %422 = vmatpush.bf16.msra.mxu0 %v1207_v0  ;;  %1224 = vmatpush.bf16.msra.mxu1 %v1207_v0  ;;  %v1205_v2 = vld [vmem:[#allocation6 + $0x28] sm:$0xff]  ;;  %v1204_v3 = vld [vmem:[#allocation6 + $0x20] sm:$0xff]  ;;  %v1203_v4 = vld [vmem:[#allocation6 + $0x18] sm:$0xff]  ;;  %s914_s27 = sshll.u32 %s1421_s26, 4  ;;  %s916_s30 = sshll.u32 %s1673_s7, 4  ;;  %s915_s27 = int_to_ptr.vmem [resolvable:$true] %s914_s27  ;;  %s917_s30 = int_to_ptr.hbm [resolvable:$true] %s916_s30 }
  0x16   :  { %1226 = vmatpush.bf16.msra.mxu3 %v1207_v0  ;;  %1225 = vmatpush.bf16.msra.mxu2 %v1207_v0  ;;  %v1202_v5 = vld [vmem:[#allocation6 + $0x10] sm:$0xff]  ;;  %v1201_v6 = vld [vmem:[#allocation6 + $0x8] sm:$0xff]  ;;  %v1200_v7 = vld [vmem:[#allocation6] sm:$0xff]  ;;  %s927_s14 = sshll.u32 %s1674_s8, 4  ;;  %s928_s14 = int_to_ptr.hbm [resolvable:$true] %s927_s14 }
  0x17   :  { %v1168_v8 = vld [vmem:[#allocation3] sm:$0xff]  ;;  %v1177_v9 = vld [vmem:[#allocation3 + $0x48] sm:$0xff]  ;;  %v1191_v10 = vld [vmem:[#allocation3 + $0xb8] sm:$0xff] }
  0x18   :  { %v1185_v11 = vld [vmem:[#allocation3 + $0x88] sm:$0xff]  ;;  %v1178_v13 = vld [vmem:[#allocation3 + $0x50] sm:$0xff]  ;;  %v1192_v14 = vld [vmem:[#allocation3 + $0xc0] sm:$0xff] }
  0x19   :  { %423 = vmatpush.bf16.msra.mxu0 %v1206_v1  ;;  %1227 = vmatpush.bf16.msra.mxu1 %v1206_v1  ;;  %v1169_v12 = vld [vmem:[#allocation3 + $0x8] sm:$0xff]  ;;  %v1186_v15 = vld [vmem:[#allocation3 + $0x90] sm:$0xff]  ;;  %v1179_v17 = vld [vmem:[#allocation3 + $0x58] sm:$0xff] }
  0x1a   :  { %1229 = vmatpush.bf16.msra.mxu3 %v1206_v1  ;;  %1228 = vmatpush.bf16.msra.mxu2 %v1206_v1  ;;  %v1170_v16 = vld [vmem:[#allocation3 + $0x10] sm:$0xff]  ;;  %v1193_v18 = vld [vmem:[#allocation3 + $0xc8] sm:$0xff]  ;;  %v1187_v19 = vld [vmem:[#allocation3 + $0x98] sm:$0xff] }
  0x1b   :  { %v1171_v20 = vld [vmem:[#allocation3 + $0x18] sm:$0xff]  ;;  %v1180_v21 = vld [vmem:[#allocation3 + $0x60] sm:$0xff]  ;;  %v1194_v22 = vld [vmem:[#allocation3 + $0xd0] sm:$0xff] }
  0x1c   :  { %v1188_v23 = vld [vmem:[#allocation3 + $0xa0] sm:$0xff]  ;;  %v1181_v25 = vld [vmem:[#allocation3 + $0x68] sm:$0xff]  ;;  %v1195_v26 = vld [vmem:[#allocation3 + $0xd8] sm:$0xff] }
  0x1d   :  { %424 = vmatpush.bf16.msra.mxu0 %v1205_v2  ;;  %1230 = vmatpush.bf16.msra.mxu1 %v1205_v2  ;;  %v1172_v24 = vld [vmem:[#allocation3 + $0x20] sm:$0xff]  ;;  %v1189_v27 = vld [vmem:[#allocation3 + $0xa8] sm:$0xff]  ;;  %v1182_v29 = vld [vmem:[#allocation3 + $0x70] sm:$0xff] }
  0x1e   :  { %1232 = vmatpush.bf16.msra.mxu3 %v1205_v2  ;;  %1231 = vmatpush.bf16.msra.mxu2 %v1205_v2  ;;  %v1173_v28 = vld [vmem:[#allocation3 + $0x28] sm:$0xff]  ;;  %v1196_v30 = vld [vmem:[#allocation3 + $0xe0] sm:$0xff]  ;;  %v1190_v31 = vld [vmem:[#allocation3 + $0xb0] sm:$0xff] }
  0x1f   :  { %v1174_v32 = vld [vmem:[#allocation3 + $0x30] sm:$0xff]  ;;  %v1183_v33 = vld [vmem:[#allocation3 + $0x78] sm:$0xff]  ;;  %v1197_v34 = vld [vmem:[#allocation3 + $0xe8] sm:$0xff] }
  0x20   :  { %v1175_v35 = vld [vmem:[#allocation3 + $0x38] sm:$0xff]  ;;  %v1184_v36 = vld [vmem:[#allocation3 + $0x80] sm:$0xff]  ;;  %v1198_v37 = vld [vmem:[#allocation3 + $0xf0] sm:$0xff] }
  0x21   :  { %425 = vmatpush.bf16.msra.mxu0 %v1204_v3  ;;  %1233 = vmatpush.bf16.msra.mxu1 %v1204_v3  ;;  %v1176_v38 = vld [vmem:[#allocation3 + $0x40] sm:$0xff]  ;;  %v1199_v41 = vld [vmem:[#allocation3 + $0xf8] sm:$0xff] }
  0x22   :  { %1235 = vmatpush.bf16.msra.mxu3 %v1204_v3  ;;  %1234 = vmatpush.bf16.msra.mxu2 %v1204_v3  ;;  %v1485_v42 = vld [vmem:[%s1668_s2] ss:$0 sm:$0xff] }
  0x25   :  { %426 = vmatpush.bf16.msra.mxu0 %v1203_v4  ;;  %1236 = vmatpush.bf16.msra.mxu1 %v1203_v4 }
  0x26   :  { %1238 = vmatpush.bf16.msra.mxu3 %v1203_v4  ;;  %1237 = vmatpush.bf16.msra.mxu2 %v1203_v4 }
  0x29   :  { %427 = vmatpush.bf16.msra.mxu0 %v1202_v5  ;;  %1239 = vmatpush.bf16.msra.mxu1 %v1202_v5 }
  0x2a   :  { %1241 = vmatpush.bf16.msra.mxu3 %v1202_v5  ;;  %1240 = vmatpush.bf16.msra.mxu2 %v1202_v5 }
  0x2d   :  { %428 = vmatpush.bf16.msra.mxu0 %v1201_v6  ;;  %1242 = vmatpush.bf16.msra.mxu1 %v1201_v6 }
  0x2e   :  { %1244 = vmatpush.bf16.msra.mxu3 %v1201_v6  ;;  %1243 = vmatpush.bf16.msra.mxu2 %v1201_v6 }
  0x31   :  { %429 = vmatpush.bf16.msra.mxu0 %v1200_v7  ;;  %1245 = vmatpush.bf16.msra.mxu1 %v1200_v7 }
  0x32   :  { %1247 = vmatpush.bf16.msra.mxu3 %v1200_v7  ;;  %1246 = vmatpush.bf16.msra.mxu2 %v1200_v7 }
  0x34   :  { %430 = vmatmul.bf16.vlgmr.msra.gmra.mxu0 %v1168_v8  ;;  %475 = vmatmul.bf16.vlgmr.msra.gmra.mxu1 %v1177_v9 }
  0x35   :  { %545 = vmatmul.bf16.vlgmr.msra.gmra.mxu3 %v1191_v10  ;;  %515 = vmatmul.bf16.vlgmr.msra.gmra.mxu2 %v1185_v11 }
  0x44   :  { %435 = vmatmul.bf16.gmra.mxu0 %v1169_v12  ;;  %480 = vmatmul.bf16.gmra.mxu1 %v1178_v13 }
  0x45   :  { %550 = vmatmul.bf16.gmra.mxu3 %v1192_v14  ;;  %520 = vmatmul.bf16.gmra.mxu2 %v1186_v15 }
  0x54   :  { %440 = vmatmul.bf16.gmra.mxu0 %v1170_v16  ;;  %485 = vmatmul.bf16.gmra.mxu1 %v1179_v17 }
  0x55   :  { %555 = vmatmul.bf16.gmra.mxu3 %v1193_v18  ;;  %525 = vmatmul.bf16.gmra.mxu2 %v1187_v19  ;;  %v1215_v19 = vld [vmem:[#allocation8 + $0x38] sm:$0xff] }
  0x56   :  { %811 = vmatpush.bf16.msrb.mxu1 %v1215_v19 }
  0x64   :  { %445 = vmatmul.bf16.gmra.mxu0 %v1171_v20  ;;  %490 = vmatmul.bf16.gmra.mxu1 %v1180_v21 }
  0x65   :  { %560 = vmatmul.bf16.gmra.mxu3 %v1194_v22  ;;  %530 = vmatmul.bf16.gmra.mxu2 %v1188_v23 }
  0x74   :  { %450 = vmatmul.bf16.gmra.mxu0 %v1172_v24  ;;  %495 = vmatmul.bf16.gmra.mxu1 %v1181_v25 }
  0x75   :  { %565 = vmatmul.bf16.gmra.mxu3 %v1195_v26  ;;  %535 = vmatmul.bf16.gmra.mxu2 %v1189_v27 }
  0x84   :  { %455 = vmatmul.bf16.gmra.mxu0 %v1173_v28  ;;  %500 = vmatmul.bf16.gmra.mxu1 %v1182_v29  ;;  %v1214_v28 = vld [vmem:[#allocation8 + $0x30] sm:$0xff] }
  0x85   :  { %570 = vmatmul.bf16.gmra.mxu3 %v1196_v30  ;;  %540 = vmatmul.bf16.gmra.mxu2 %v1190_v31 }
  0x86   :  { %812 = vmatpush.bf16.msrb.mxu1 %v1214_v28 }
  0x94   :  { %460 = vmatmul.bf16.gmra.mxu0 %v1174_v32  ;;  %505 = vmatmul.bf16.gmra.mxu1 %v1183_v33 }
  0x95   :  { %575 = vmatmul.bf16.gmra.mxu3 %v1197_v34 }
  0xa4   :  { %465 = vmatmul.bf16.gmra.mxu0 %v1175_v35  ;;  %510 = vmatmul.bf16.gmra.mxu1 %v1184_v36  ;;  %v1213_v36 = vld [vmem:[#allocation8 + $0x28] sm:$0xff] }
  0xa5   :  { %580 = vmatmul.bf16.gmra.mxu3 %v1198_v37  ;;  %813 = vmatpush.bf16.msrb.mxu1 %v1213_v36 }
  0xb1   :  { %v431_v39 = vpop.f32.mrf.mxu0  ;;  %v1480_v40 = vpop.f32.mrf.mxu1 }
  0xb2   :  { %v432_v43 = vadd.f32 %v1485_v42, %v431_v39 }
  0xb4   :  { %470 = vmatmul.bf16.gmra.mxu0 %v1176_v38  ;;  %v591_v47 = vmax.f32 %v432_v43, 0.0 }
  0xb5   :  { %585 = vmatmul.bf16.gmra.mxu3 %v1199_v41 }
  0xb8   :  { %v1488_v44 = vpop.f32.mrf.mxu3  ;;  %v1503_v63 = vpop.f32.mrf.mxu2 }
  0xb9   :  { %v433_v45 = vpop.f32.mrf.mxu0  ;;  %v1490_v46 = vpop.f32.mrf.mxu1 }
  0xba   :  { %v434_v48 = vadd.f32 %v1485_v42, %v433_v45 }
  0xbc   :  { %v592_v49 = vmax.f32 %v434_v48, 0.0 }
  0xbe   :  { %v656_v50 = vadd.f32 %v592_v49, %v591_v47 }
  0xc0   :  { %v1493_v51 = vpop.f32.mrf.mxu3  ;;  %v1510_v6 = vpop.f32.mrf.mxu2 }
  0xc1   :  { %v436_v52 = vpop.f32.mrf.mxu0  ;;  %v1495_v53 = vpop.f32.mrf.mxu1 }
  0xc2   :  { %v437_v54 = vadd.f32 %v1485_v42, %v436_v52 }
  0xc4   :  { %v593_v55 = vmax.f32 %v437_v54, 0.0 }
  0xc6   :  { %v657_v56 = vadd.f32 %v656_v50, %v593_v55 }
  0xc8   :  { %v1501_v60 = vpop.f32.mrf.mxu3  ;;  %v521_v16 = vpop.f32.mrf.mxu2 }
  0xc9   :  { %v438_v57 = vpop.f32.mrf.mxu0  ;;  %v1498_v58 = vpop.f32.mrf.mxu1 }
  0xca   :  { %v439_v59 = vadd.f32 %v1485_v42, %v438_v57 }
  0xcc   :  { %v594_v61 = vmax.f32 %v439_v59, 0.0  ;;  %v1212_v59 = vld [vmem:[#allocation8 + $0x20] sm:$0xff] }
  0xcd   :  { %814 = vmatpush.bf16.msrb.mxu1 %v1212_v59 }
  0xce   :  { %v658_v62 = vadd.f32 %v657_v56, %v594_v61 }
  0xd0   :  { %v1508_v4 = vpop.f32.mrf.mxu3  ;;  %v523_v23 = vpop.f32.mrf.mxu2 }
  0xd1   :  { %v441_v0 = vpop.f32.mrf.mxu0  ;;  %v1505_v1 = vpop.f32.mrf.mxu1 }
  0xd2   :  { %v442_v2 = vadd.f32 %v1485_v42, %v441_v0 }
  0xd4   :  { %v595_v3 = vmax.f32 %v442_v2, 0.0 }
  0xd6   :  { %v659_v5 = vadd.f32 %v658_v62, %v595_v3 }
  0xd8   :  { %v1515_v12 = vpop.f32.mrf.mxu3  ;;  %v1528_v27 = vpop.f32.mrf.mxu2 }
  0xd9   :  { %v443_v7 = vpop.f32.mrf.mxu0  ;;  %v1512_v8 = vpop.f32.mrf.mxu1 }
  0xda   :  { %v444_v9 = vadd.f32 %v1485_v42, %v443_v7 }
  0xdc   :  { %v596_v10 = vmax.f32 %v444_v9, 0.0  ;;  %v517_v9 = vadd.f32 %v1485_v42, %v1503_v63  ;;  %v522_v63 = vadd.f32 %v1485_v42, %v521_v16 }
  0xde   :  { %v660_v11 = vadd.f32 %v659_v5, %v596_v10 }
  0xe0   :  { %v1520_v20 = vpop.f32.mrf.mxu3  ;;  %v1534_v32 = vpop.f32.mrf.mxu2 }
  0xe1   :  { %v446_v13 = vpop.f32.mrf.mxu0  ;;  %v1517_v14 = vpop.f32.mrf.mxu1 }
  0xe2   :  { %v447_v15 = vadd.f32 %v1485_v42, %v446_v13 }
  0xe4   :  { %v597_v17 = vmax.f32 %v447_v15, 0.0 }
  0xe6   :  { %v661_v18 = vadd.f32 %v660_v11, %v597_v17 }
  0xe8   :  { %v1526_v26 = vpop.f32.mrf.mxu3  ;;  %v531_v39 = vpop.f32.mrf.mxu2 }
  0xe9   :  { %v448_v21 = vpop.f32.mrf.mxu0  ;;  %v1522_v22 = vpop.f32.mrf.mxu1 }
  0xea   :  { %v449_v54 = vadd.f32 %v1485_v42, %v448_v21  ;;  %v519_v21 = vadd.f32 %v1485_v42, %v1510_v6 }
  0xec   :  { %v598_v61 = vmax.f32 %v449_v54, 0.0  ;;  %v625_v54 = vmax.f32 %v517_v9, 0.0  ;;  %v527_v9 = vadd.f32 %v1485_v42, %v1528_v27 }
  0xee   :  { %v662_v10 = vadd.f32 %v661_v18, %v598_v61  ;;  %v524_v61 = vadd.f32 %v1485_v42, %v523_v23  ;;  %v529_v23 = vadd.f32 %v1485_v42, %v1534_v32  ;;  %v477_v32 = vadd.f32 %v1485_v42, %v1480_v40 }
  0xf0   :  { %v1532_v31 = vpop.f32.mrf.mxu3  ;;  %v1546_v47 = vpop.f32.mrf.mxu2 }
  0xf1   :  { %v451_v24 = vpop.f32.mrf.mxu0  ;;  %v1524_v25 = vpop.f32.mrf.mxu1 }
  0xf2   :  { %v452_v57 = vadd.f32 %v1485_v42, %v451_v24 }
  0xf4   :  { %v599_v2 = vmax.f32 %v452_v57, 0.0 }
  0xf6   :  { %v663_v24 = vadd.f32 %v662_v10, %v599_v2 }
  0xf8   :  { %v1538_v35 = vpop.f32.mrf.mxu3  ;;  %v1552_v52 = vpop.f32.mrf.mxu2 }
  0xf9   :  { %v453_v29 = vpop.f32.mrf.mxu0  ;;  %v1530_v30 = vpop.f32.mrf.mxu1 }
  0xfa   :  { %v454_v0 = vadd.f32 %v1485_v42, %v453_v29 }
  0xfc   :  { %v600_v15 = vmax.f32 %v454_v0, 0.0 }
  0xfe   :  { %v664_v18 = vadd.f32 %v663_v24, %v600_v15 }
 0x100   :  { %v1542_v41 = vpop.f32.mrf.mxu3  ;;  %v538_v7 = vpop.f32.mrf.mxu2 }
 0x101   :  { %v456_v33 = vpop.f32.mrf.mxu0  ;;  %v1536_v34 = vpop.f32.mrf.mxu1 }
 0x102   :  { %v457_v3 = vadd.f32 %v1485_v42, %v456_v33 }
 0x104   :  { %v601_v28 = vmax.f32 %v457_v3, 0.0 }
 0x106   :  { %v665_v6 = vadd.f32 %v664_v18, %v601_v28 }
 0x108   :  { %v1550_v50 = vpop.f32.mrf.mxu3 }
 0x109   :  { %v458_v37 = vpop.f32.mrf.mxu0  ;;  %v1540_v38 = vpop.f32.mrf.mxu1 }
 0x10a   :  { %v459_v17 = vadd.f32 %v1485_v42, %v458_v37  ;;  %v626_v37 = vmax.f32 %v519_v21, 0.0 }
 0x110   :  { %v1556_v62 = vpop.f32.mrf.mxu3 }
 0x111   :  { %v461_v43 = vpop.f32.mrf.mxu0  ;;  %v1544_v45 = vpop.f32.mrf.mxu1 }
 0x112   :  { %v462_v29 = vadd.f32 %v1485_v42, %v461_v43 }
 0x114   :  { %v603_v2 = vmax.f32 %v462_v29, 0.0  ;;  %v532_v29 = vadd.f32 %v1485_v42, %v531_v39  ;;  %v537_v39 = vadd.f32 %v1485_v42, %v1552_v52 }
 0x118   :  { %v1571_v0 = vpop.f32.mrf.mxu3 }
 0x119   :  { %v463_v48 = vpop.f32.mrf.mxu0  ;;  %v1548_v49 = vpop.f32.mrf.mxu1 }
 0x11a   :  { %v464_v57 = vadd.f32 %v1485_v42, %v463_v48 }
 0x121   :  { %v466_v55 = vpop.f32.mrf.mxu0  ;;  %v511_v56 = vpop.f32.mrf.mxu1 }
 0x122   :  { %v512_v5 = vadd.f32 %v1485_v42, %v511_v56  ;;  %v602_v56 = vmax.f32 %v459_v17, 0.0  ;;  %v467_v3 = vadd.f32 %v1485_v42, %v466_v55  ;;  %v628_v17 = vmax.f32 %v524_v61, 0.0  ;;  %v1585_v61 = vpop.f32.mrf.mxu3 }
 0x124   :  { %v623_v33 = vmax.f32 %v512_v5, 0.0  ;;  %v627_v5 = vmax.f32 %v522_v63, 0.0  ;;  %v666_v10 = vadd.f32 %v665_v6, %v602_v56  ;;  %v605_v24 = vmax.f32 %v467_v3, 0.0 }
 0x125   :  { %v630_v63 = vmax.f32 %v529_v23, 0.0 }
 0x126   :  { %v667_v21 = vadd.f32 %v666_v10, %v603_v2  ;;  %v609_v10 = vmax.f32 %v477_v32, 0.0  ;;  %v1211_v32 = vld [vmem:[#allocation8 + $0x18] sm:$0xff] }
 0x127   :  { %815 = vmatpush.bf16.msrb.mxu1 %v1211_v32 }
 0x129   :  { %v468_v11 = vpop.f32.mrf.mxu0  ;;  %v513_v13 = vpop.f32.mrf.mxu1 }
 0x12a   :  { %v514_v19 = vadd.f32 %v1485_v42, %v513_v13  ;;  %v604_v13 = vmax.f32 %v464_v57, 0.0  ;;  %v469_v48 = vadd.f32 %v1485_v42, %v468_v11  ;;  %v534_v11 = vadd.f32 %v1485_v42, %v1546_v47 }
 0x12b   :  { %v479_v47 = vadd.f32 %v1485_v42, %v1490_v46  ;;  %v484_v46 = vadd.f32 %v1485_v42, %v1498_v58  ;;  %v549_v58 = vadd.f32 %v1485_v42, %v1493_v51 }
 0x12c   :  { %v624_v36 = vmax.f32 %v514_v19, 0.0  ;;  %v541_v19 = vpop.f32.mrf.mxu2  ;;  %v668_v27 = vadd.f32 %v667_v21, %v604_v13  ;;  %v482_v13 = vadd.f32 %v1485_v42, %v1495_v53  ;;  %v487_v53 = vadd.f32 %v1485_v42, %v1505_v1 }
 0x12d   :  { %v610_v21 = vmax.f32 %v479_v47, 0.0  ;;  %v552_v1 = vadd.f32 %v1485_v42, %v1501_v60  ;;  %v638_v51 = vmax.f32 %v549_v58, 0.0  ;;  %v557_v60 = vadd.f32 %v1485_v42, %v1515_v12 }
 0x12e   :  { %v693_v59 = vadd.f32 %v624_v36, %v623_v33  ;;  %v629_v33 = vmax.f32 %v527_v9, 0.0  ;;  %v606_v36 = vmax.f32 %v469_v48, 0.0  ;;  %v669_v18 = vadd.f32 %v668_v27, %v605_v24 }
 0x12f   :  { %v641_v12 = vmax.f32 %v557_v60, 0.0 }
 0x130   :  { %v694_v43 = vadd.f32 %v693_v59, %v625_v54  ;;  %v631_v59 = vmax.f32 %v532_v29, 0.0  ;;  %v670_v6 = vadd.f32 %v669_v18, %v606_v36  ;;  %v611_v29 = vmax.f32 %v482_v13, 0.0 }
 0x131   :  { %v471_v16 = vpop.f32.mrf.mxu0 }
 0x132   :  { %v695_v15 = vadd.f32 %v694_v43, %v626_v37  ;;  %v472_v55 = vadd.f32 %v1485_v42, %v471_v16  ;;  %v632_v43 = vmax.f32 %v534_v11, 0.0  ;;  %v1607_v11 = vpop.f32.mrf.mxu3 }
 0x134   :  { %v696_v28 = vadd.f32 %v695_v15, %v627_v5  ;;  %v607_v57 = vmax.f32 %v472_v55, 0.0  ;;  %v539_v5 = vadd.f32 %v1485_v42, %v538_v7  ;;  %v543_v48 = vpop.f32.mrf.mxu2  ;;  %v633_v15 = vmax.f32 %v537_v39, 0.0 }
 0x135   :  { %v544_v55 = vadd.f32 %v1485_v42, %v543_v48 }
 0x136   :  { %v697_v54 = vadd.f32 %v696_v28, %v628_v17  ;;  %v671_v16 = vadd.f32 %v670_v6, %v607_v57  ;;  %v542_v17 = vadd.f32 %v1485_v42, %v541_v19  ;;  %v634_v24 = vmax.f32 %v539_v5, 0.0  ;;  %v1210_v5 = vld [vmem:[#allocation8 + $0x10] sm:$0xff] }
 0x137   :  { %v636_v57 = vmax.f32 %v544_v55, 0.0  ;;  %816 = vmatpush.bf16.msrb.mxu1 %v1210_v5 }
 0x138   :  { %v698_v56 = vadd.f32 %v697_v54, %v629_v33  ;;  %v547_v33 = vadd.f32 %v1485_v42, %v1488_v44  ;;  %v635_v36 = vmax.f32 %v542_v17, 0.0  ;;  %v489_v54 = vadd.f32 %v1485_v42, %v1512_v8 }
 0x139   :  { %v473_v37 = vpop.f32.mrf.mxu0 }
 0x13a   :  { %v699_v2 = vadd.f32 %v698_v56, %v630_v63  ;;  %v474_v3 = vadd.f32 %v1485_v42, %v473_v37  ;;  %v612_v63 = vmax.f32 %v484_v46, 0.0  ;;  %v637_v44 = vmax.f32 %v547_v33, 0.0 }
 0x13b   :  { %v492_v37 = vadd.f32 %v1485_v42, %v1517_v14  ;;  %v614_v6 = vmax.f32 %v489_v54, 0.0 }
 0x13c   :  { %v700_v9 = vadd.f32 %v699_v2, %v631_v59  ;;  %v608_v40 = vmax.f32 %v474_v3, 0.0  ;;  %v613_v59 = vmax.f32 %v487_v53, 0.0  ;;  %v554_v2 = vadd.f32 %v1485_v42, %v1508_v4 }
 0x13d   :  { %v494_v3 = vadd.f32 %v1485_v42, %v1522_v22  ;;  %v615_v14 = vmax.f32 %v492_v37, 0.0  ;;  %v559_v22 = vadd.f32 %v1485_v42, %v1520_v20  ;;  %v564_v20 = vadd.f32 %v1485_v42, %v1532_v31 }
 0x13e   :  { %v701_v52 = vadd.f32 %v700_v9, %v632_v43  ;;  %v672_v23 = vadd.f32 %v671_v16, %v608_v40  ;;  %v639_v9 = vmax.f32 %v552_v1, 0.0  ;;  %v1420_v16 = vmov 0.0  }
 0x13f   :  { %97 = vst [vmem:[#allocation2] sm:$0x3] %v1420_v16  ;;  %v497_v40 = vadd.f32 %v1485_v42, %v1524_v25  ;;  %v640_v4 = vmax.f32 %v554_v2, 0.0  ;;  %v616_v48 = vmax.f32 %v494_v3, 0.0  ;;  %v502_v25 = vadd.f32 %v1485_v42, %v1536_v34  ;;  %v1209_v2 = vld [vmem:[#allocation8 + $0x8] sm:$0xff] }
 0x140   :  { %v702_v28 = vadd.f32 %v701_v52, %v633_v15  ;;  %v673_v7 = vadd.f32 %v672_v23, %v609_v10  ;;  %v499_v15 = vadd.f32 %v1485_v42, %v1530_v30  ;;  %v562_v23 = vadd.f32 %v1485_v42, %v1526_v26  ;;  %817 = vmatpush.bf16.msrb.mxu1 %v1209_v2 }
 0x141   :  { %v617_v46 = vmax.f32 %v497_v40, 0.0  ;;  %v504_v30 = vadd.f32 %v1485_v42, %v1540_v38  ;;  %v567_v26 = vadd.f32 %v1485_v42, %v1538_v35  ;;  %v507_v34 = vadd.f32 %v1485_v42, %v1544_v45 }
 0x142   :  { %v703_v27 = vadd.f32 %v702_v28, %v634_v24  ;;  %v674_v19 = vadd.f32 %v673_v7, %v610_v21  ;;  %v583_v21 = vpop.f32.mrf.mxu3  ;;  %v642_v7 = vmax.f32 %v559_v22, 0.0  ;;  %v618_v55 = vmax.f32 %v499_v15, 0.0 }
 0x143   :  { %v643_v53 = vmax.f32 %v562_v23, 0.0  ;;  %v644_v54 = vmax.f32 %v564_v20, 0.0  ;;  %v569_v31 = vadd.f32 %v1485_v42, %v1542_v41  ;;  %v620_v58 = vmax.f32 %v504_v30, 0.0  ;;  %v1220_v30 = vld [vmem:[#allocation9 + $0x20] sm:$0xff] }
 0x144   :  { %v704_v18 = vadd.f32 %v703_v27, %v635_v36  ;;  %v675_v56 = vadd.f32 %v674_v19, %v611_v29  ;;  %v619_v27 = vmax.f32 %v502_v25, 0.0  ;;  %v509_v38 = vadd.f32 %v1485_v42, %v1548_v49 }
 0x145   :  { %v572_v35 = vadd.f32 %v1485_v42, %v1550_v50  ;;  %v646_v45 = vmax.f32 %v569_v31, 0.0  ;;  %v574_v37 = vadd.f32 %v1485_v42, %v1556_v62  ;;  %v577_v49 = vadd.f32 %v1485_v42, %v1571_v0  ;;  %v1217_v31 = vld [vmem:[#allocation9 + $0x8] sm:$0xff] }
 0x146   :  { %v676_v39 = vadd.f32 %v675_v56, %v612_v63  ;;  %v705_v8 = vadd.f32 %v704_v18, %v636_v57  ;;  %v645_v56 = vmax.f32 %v567_v26, 0.0  ;;  %v621_v57 = vmax.f32 %v507_v34, 0.0  ;;  %v655_v26 = vld [vmem:[#allocation2] sm:$0x3] }
 0x147   :  { %v648_v3 = vmax.f32 %v574_v37, 0.0  ;;  %v579_v50 = vadd.f32 %v1485_v42, %v1585_v61  ;;  %v649_v5 = vmax.f32 %v577_v49, 0.0  ;;  %v582_v62 = vadd.f32 %v1485_v42, %v1607_v11 }
 0x148   :  { %v677_v47 = vadd.f32 %v676_v39, %v613_v59  ;;  %v706_v43 = vadd.f32 %v705_v8, %v637_v44  ;;  %v622_v59 = vmax.f32 %v509_v38, 0.0  ;;  %v647_v8 = vmax.f32 %v572_v35, 0.0 }
 0x149   :  { %v650_v60 = vmax.f32 %v579_v50, 0.0 }
 0x14a   :  { %v678_v10 = vadd.f32 %v677_v47, %v614_v6  ;;  %v707_v13 = vadd.f32 %v706_v43, %v638_v51  ;;  %v586_v1 = vpop.f32.mrf.mxu3  ;;  %v1208_v43 = vld [vmem:[#allocation8] sm:$0xff] }
 0x14b   :  { %818 = vmatpush.bf16.msrb.mxu1 %v1208_v43 }
 0x14c   :  { %v679_v52 = vadd.f32 %v678_v10, %v615_v14  ;;  %v708_v17 = vadd.f32 %v707_v13, %v639_v9  ;;  %v584_v14 = vadd.f32 %v1485_v42, %v583_v21  ;;  %v651_v10 = vmax.f32 %v582_v62, 0.0 }
 0x14d   :  { %v587_v13 = vadd.f32 %v1485_v42, %v586_v1  ;;  %v1259_v1 = vld [vmem:[%s1672_s6] ss:$0 sm:$0xff] }
 0x14e   :  { %v680_v24 = vadd.f32 %v679_v52, %v616_v48  ;;  %v709_v28 = vadd.f32 %v708_v17, %v640_v4  ;;  %v652_v22 = vmax.f32 %v584_v14, 0.0 }
 0x14f   :  { %v653_v52 = vmax.f32 %v587_v13, 0.0 }
 0x150   :  { %v681_v29 = vadd.f32 %v680_v24, %v617_v46  ;;  %v710_v33 = vadd.f32 %v709_v28, %v641_v12  ;;  %v1223_v12 = vld [vmem:[#allocation9 + $0x38] sm:$0xff]  ;;  %v1222_v46 = vld [vmem:[#allocation9 + $0x30] sm:$0xff]  ;;  %v1221_v28 = vld [vmem:[#allocation9 + $0x28] sm:$0xff] }
 0x151   :  { %895 = vmatpush.bf16.msrb.mxu2 %v1223_v12 }
 0x152   :  { %v682_v36 = vadd.f32 %v681_v29, %v618_v55  ;;  %v711_v19 = vadd.f32 %v710_v33, %v642_v7  ;;  %v588_v0 = vpop.f32.mrf.mxu3 }
 0x153   :  { %v589_v48 = vadd.f32 %v1485_v42, %v588_v0 }
 0x154   :  { %v683_v63 = vadd.f32 %v682_v36, %v619_v27  ;;  %v712_v18 = vadd.f32 %v711_v19, %v643_v53  ;;  %v1219_v53 = vld [vmem:[#allocation9 + $0x18] sm:$0xff] }
 0x155   :  { %v654_v23 = vmax.f32 %v589_v48, 0.0  ;;  %896 = vmatpush.bf16.msrb.mxu2 %v1222_v46 }
 0x156   :  { %v684_v32 = vadd.f32 %v683_v63, %v620_v58  ;;  %v713_v44 = vadd.f32 %v712_v18, %v644_v54  ;;  %v1218_v54 = vld [vmem:[#allocation9 + $0x10] sm:$0xff]  ;;  %v1216_v58 = vld [vmem:[#allocation9] sm:$0xff] }
 0x158   :  { %v714_v41 = vadd.f32 %v713_v44, %v645_v56  ;;  %v685_v39 = vadd.f32 %v684_v32, %v621_v57  ;;  %v1258_v56 = vld [vmem:[%s1670_s4] ss:$0 sm:$0xff]  ;;  %s1422_s4 = smov [#allocation12]  }
 0x159   :  { %897 = vmatpush.bf16.msrb.mxu2 %v1221_v28  ;;  %s925_s11 = sshll.u32 %s1422_s4, 4  ;;  %s926_s11 = int_to_ptr.vmem [resolvable:$true] %s925_s11 }
 0x15a   :  { %v715_v6 = vadd.f32 %v714_v41, %v646_v45  ;;  %v686_v51 = vadd.f32 %v685_v39, %v622_v59 }
 0x15c   :  { %v716_v47 = vadd.f32 %v715_v6, %v647_v8  ;;  %v687_v4 = vrot.slane %v686_v51, 4 }
 0x15d   :  { %898 = vmatpush.bf16.msrb.mxu2 %v1220_v30 }
 0x15e   :  { %v717_v9 = vadd.f32 %v716_v47, %v648_v3  ;;  %v688_v17 = vadd.f32 %v687_v4, %v686_v51 }
 0x160   :  { %v718_v16 = vadd.f32 %v717_v9, %v649_v5  ;;  %v689_v21 = vrot.slane %v688_v17, 2 }
 0x161   :  { %899 = vmatpush.bf16.msrb.mxu2 %v1219_v53 }
 0x162   :  { %v719_v40 = vadd.f32 %v718_v16, %v650_v60  ;;  %v690_v7 = vadd.f32 %v689_v21, %v688_v17 }
 0x164   :  { %v720_v61 = vadd.f32 %v719_v40, %v651_v10  ;;  %v691_v29 = vrot.slane %v690_v7, 1 }
 0x165   :  { %900 = vmatpush.bf16.msrb.mxu2 %v1218_v54 }
 0x166   :  { %v721_v15 = vadd.f32 %v720_v61, %v652_v22  ;;  %v692_v27 = vadd.f32 %v691_v29, %v690_v7 }
 0x168   :  { %v722_v11 = vadd.f32 %v721_v15, %v653_v52 }
 0x169   :  { %901 = vmatpush.bf16.msrb.mxu2 %v1217_v31 }
 0x16a   :  { %v723_v25 = vadd.f32 %v722_v11, %v654_v23 }
 0x16c   :  { %v724_v24 = vrot.slane %v723_v25, 4 }
 0x16d   :  { %902 = vmatpush.bf16.msrb.mxu2 %v1216_v58 }
 0x16e   :  { %v725_v20 = vadd.f32 %v724_v24, %v723_v25 }
 0x170   :  { %v726_v55 = vrot.slane %v725_v20, 2 }
 0x172   :  { %v727_v42 = vadd.f32 %v726_v55, %v725_v20 }
 0x174   :  { %v728_v33 = vrot.slane %v727_v42, 1 }
 0x176   :  { %v729_v34 = vadd.f32 %v728_v33, %v727_v42 }
 0x178   :  { %v733_v36 = vsel %vm732_vm0, %v729_v34, %v692_v27 }
 0x179   :  { %v735_v19 = vadd.f32 %v733_v36, %v655_v26 }
 0x17b   :  { %736 = vst [vmem:[#allocation2] sm:$0x3] %v735_v19 }
 0x182   :  { %v740_v38 = vld [vmem:[#allocation2] sm:$0x3] }
 0x183   :  { %v741_v63 = vmul.f32 0.00390625, %v740_v38 }
 0x185   :  { %v742_v18 = vpack.c.bf16 %v741_v63, %v741_v63 }
 0x187   :  { %819 = vmatmul.bf16.vlgmr.msrb.gmra.mxu1 %v742_v18 }
 0x204   :  { %v820_v57 = vpop.f32.mrf.mxu1 }
 0x205   :  { %v821_v35 = vadd.f32 %v1258_v56, %v820_v57 }
 0x207   :  { %824 = vst [vmem:[#allocation11] sm:$0x3] %v821_v35  ;;  %v825_v32 = vmax.f32 %v821_v35, 0.0 }
 0x208   :  { %919 = dma.vmem_to_hbm [thread:$0]  %s915_s27, 32, %s917_s30, [#allocation5]  }
 0x209   :  { %v826_v44 = vpack.c.bf16 %v825_v32, %v825_v32 }
 0x20b   :  { %903 = vmatmul.bf16.vlgmr.msrb.gmra.mxu2 %v826_v44 }
 0x20c   :  { %v822_v45 = vpop.f32.mrf.mxu1 }
 0x28e   :  { %v904_v59 = vpop.f32.mrf.mxu2 }
 0x28f   :  { %v905_v37 = vadd.f32 %v1259_v1, %v904_v59 }
 0x291   :  { %908 = vst [vmem:[#allocation12] sm:$0x3] %v905_v37 }
 0x292   :  { %930 = dma.vmem_to_hbm [thread:$0]  %s926_s11, 32, %s928_s14, [#allocation13]  }
 0x296   :  { %v906_v41 = vpop.f32.mrf.mxu2 }
 0x297   :  { %1410 = dma.done.wait [#allocation5], 32  }
 0x298   :  { %1411 = vsyncadd [#allocation5], 4294967264 }
 0x299   :  { %1412 = dma.done.wait [#allocation13], 32  }
 0x29a   :  { %1413 = vsyncadd [#allocation13], 4294967264 }
 0x29b   :  { %939 = vsyncpa [#allocation4], 1 }
 0x29c   :  { %940 = vsyncpa [#allocation7], 1 }
 0x29d   :  { %941 = vsyncpa [#allocation10], 1 }
 0x29e   :  { %942 = vsyncpa [#allocation5], 1 }
 0x29f   :  { %943 = vsyncpa [#allocation13], 1 }

</bundles_post_ra>
